<compile_context>
chip_gen: v6e
topology: v6e:2x2x1
jax: 0.10.0
libtpu: 0.0.40
codegen_flags: <defaults>
</compile_context>

<pallas_src>
import jax
import jax.numpy as jnp
from jax.experimental import pallas as pl
from jax.experimental.pallas import tpu as pltpu

VMEM_LIMIT = 32 * 1024 * 1024  # conservative: fits v7x's scoped-VMEM default


def _choose_tile_m(m):
    """Row-tile size: a single full-dim block for small M, else an 8-aligned divisor."""
    if m <= 512:
        return m  # block == full dim is always legal, no padding required
    for t in (512, 256, 160, 128):
        if m % t == 0:
            return t
    return 256  # ragged last tile; rows are independent so this is still correct


# ---------------------------------------------------------------------------
# Kernel 1: tiled  relu(A @ W + b)   (used for the three im2col'd convolutions)
#   A: (M, K) bf16  -- patch matrix, M tiled ("parallel")
#   W: (K, OC) bf16 -- resident across all M tiles (constant index_map)
#   b: (1, OC) f32  -- bias added in f32; output stored bf16 (next layer's input)
# ---------------------------------------------------------------------------
def _matmul_bias_relu_kernel(a_ref, w_ref, b_ref, o_ref):
    acc = jnp.dot(a_ref[...], w_ref[...], preferred_element_type=jnp.float32)
    acc = jnp.maximum(acc + b_ref[...], 0.0)
    o_ref[...] = acc.astype(o_ref.dtype)


def _matmul_bias_relu(a, w, b):
    m, k = a.shape
    oc = w.shape[1]
    tm = _choose_tile_m(m)
    grid_m = pl.cdiv(m, tm)
    return pl.pallas_call(
        _matmul_bias_relu_kernel,
        out_shape=jax.ShapeDtypeStruct((m, oc), jnp.bfloat16),
        grid=(grid_m,),
        in_specs=[
            pl.BlockSpec((tm, k), lambda i: (i, 0)),
            pl.BlockSpec((k, oc), lambda i: (0, 0)),
            pl.BlockSpec((1, oc), lambda i: (0, 0)),
        ],
        out_specs=pl.BlockSpec((tm, oc), lambda i: (i, 0)),
        compiler_params=pltpu.CompilerParams(
            dimension_semantics=("parallel",),
            vmem_limit_bytes=VMEM_LIMIT),
    )(a, w, b)


def _im2col_nhwc(x, kh, kw, stride):
    """(N,H,W,C) -> (N*OH*OW, kh*kw*C) patches, feature order (kh, kw, C)."""
    n, h, w, c = x.shape
    oh = (h - kh) // stride + 1
    ow = (w - kw) // stride + 1
    cols = []
    for i in range(kh):
        for j in range(kw):
            cols.append(x[:, i:i + stride * oh:stride, j:j + stride * ow:stride, :])
    patches = jnp.stack(cols, axis=3)              # (N, OH, OW, kh*kw, C)
    return patches.reshape(n * oh * ow, kh * kw * c), oh, ow


def conv2d_relu(x, w_mat, b_row, kh, kw, stride):
    """NHWC VALID conv + ReLU as im2col + tiled Pallas matmul. Returns NHWC bf16."""
    n = x.shape[0]
    oc = w_mat.shape[1]
    patches, oh, ow = _im2col_nhwc(x, kh, kw, stride)
    out = _matmul_bias_relu(patches, w_mat, b_row)
    return out.reshape(n, oh, ow, oc)


# ---------------------------------------------------------------------------
# Kernel 2: fused tail  fc5(relu(fc4(flatten(x))))
#   Grid = K tiles of fc4 (reduction, "arbitrary"); f32 VMEM accumulator with
#   pl.when init/finalize; fc5 weight/bias resident; output written once.
# ---------------------------------------------------------------------------
def _fc_tail_kernel(a_ref, w4_ref, b4_ref, w5_ref, b5_ref, o_ref, acc_ref):
    k = pl.program_id(0)

    @pl.when(k == 0)
    def _():
        acc_ref[...] = jnp.zeros_like(acc_ref)

    acc_ref[...] += jnp.dot(a_ref[...], w4_ref[...],
                            preferred_element_type=jnp.float32)

    @pl.when(k == pl.num_programs(0) - 1)
    def _():
        h = jnp.maximum(acc_ref[...] + b4_ref[...], 0.0)
        out = jnp.dot(h.astype(jnp.bfloat16), w5_ref[...],
                      preferred_element_type=jnp.float32)
        o_ref[...] = out + b5_ref[...]


def fc_tail(x_flat, w4, b4, w5, b5, *, tk=640):
    n, k = x_flat.shape
    kp, hdim = w4.shape            # fc4's K (3136) was zero-padded to 3200 at init
    out_dim = w5.shape[1]
    if kp != k:
        x_flat = jnp.pad(x_flat, ((0, 0), (0, kp - k)))   # tiny (N x 64) pad
    assert kp % tk == 0
    grid_k = kp // tk
    return pl.pallas_call(
        _fc_tail_kernel,
        out_shape=jax.ShapeDtypeStruct((n, out_dim), jnp.float32),
        grid=(grid_k,),
        in_specs=[
            pl.BlockSpec((n, tk), lambda kk: (0, kk)),
            pl.BlockSpec((tk, hdim), lambda kk: (kk, 0)),
            pl.BlockSpec((1, hdim), lambda kk: (0, 0)),
            pl.BlockSpec((hdim, out_dim), lambda kk: (0, 0)),
            pl.BlockSpec((1, out_dim), lambda kk: (0, 0)),
        ],
        out_specs=pl.BlockSpec((n, out_dim), lambda kk: (0, 0)),
        scratch_shapes=[pltpu.VMEM((n, hdim), jnp.float32)],
        compiler_params=pltpu.CompilerParams(
            dimension_semantics=("arbitrary",),
            vmem_limit_bytes=VMEM_LIMIT),
    )(x_flat, w4, b4, w5, b5)


# ---------------------------------------------------------------------------
# Parameters: torch layouts for init/reference, one-time kernel-layout transform.
# ---------------------------------------------------------------------------
def init_torch_params(key, output):
    """Deterministic parameters with the exact torch Conv2d/Linear shapes."""
    def uni(k, shape, fan_in):
        bound = 1.0 / jnp.sqrt(fan_in)
        return jax.random.uniform(k, shape, jnp.float32, -bound, bound)

    ks = jax.random.split(key, 10)
    return {
        "conv1_w": uni(ks[0], (32, 4, 8, 8), 4 * 8 * 8),
        "conv1_b": uni(ks[1], (32,), 4 * 8 * 8),
        "conv2_w": uni(ks[2], (64, 32, 4, 4), 32 * 4 * 4),
        "conv2_b": uni(ks[3], (64,), 32 * 4 * 4),
        "conv3_w": uni(ks[4], (64, 64, 3, 3), 64 * 3 * 3),
        "conv3_b": uni(ks[5], (64,), 64 * 3 * 3),
        "fc4_w": uni(ks[6], (512, 7 * 7 * 64), 7 * 7 * 64),
        "fc4_b": uni(ks[7], (512,), 7 * 7 * 64),
        "fc5_w": uni(ks[8], (output, 512), 512),
        "fc5_b": uni(ks[9], (output,), 512),
    }


def prepare_params(tp, *, fc4_kp=3200):
    """One-time transform (hoisted out of the forward path):
       * conv weights -> (KH*KW*C, OC) bf16 matching the NHWC im2col feature order,
       * fc4 weight   -> input columns permuted so the NHWC flatten matches torch's
                         NCHW x.view(N,-1), rows zero-padded 3136->3200, bf16,
       * fc5 weight   -> (512, output) bf16; biases -> (1, OC) f32."""
    def conv_w(w):
        oc, c, kh, kw = w.shape
        return w.transpose(2, 3, 1, 0).reshape(kh * kw * c, oc).astype(jnp.bfloat16)

    p = {}
    for name in ("conv1", "conv2", "conv3"):
        p[name + "_w"] = conv_w(tp[name + "_w"])
        p[name + "_b"] = tp[name + "_b"].reshape(1, -1).astype(jnp.float32)

    hdim, kin = tp["fc4_w"].shape                       # (512, 3136); 3136 = 64*7*7
    w4 = tp["fc4_w"].reshape(hdim, 64, 7, 7).transpose(2, 3, 1, 0).reshape(kin, hdim)
    p["fc4_w"] = jnp.pad(w4, ((0, fc4_kp - kin), (0, 0))).astype(jnp.bfloat16)
    p["fc4_b"] = tp["fc4_b"].reshape(1, -1).astype(jnp.float32)
    p["fc5_w"] = tp["fc5_w"].T.astype(jnp.bfloat16)
    p["fc5_b"] = tp["fc5_b"].reshape(1, -1).astype(jnp.float32)
    return p


# ---------------------------------------------------------------------------
# Forward pass (interface stays NCHW / f32, PyTorch convention).
# ---------------------------------------------------------------------------
def net_forward(params, x):
    """x: (N, 4, 84, 84) f32 -> (N, output) f32."""
    x = jnp.transpose(x, (0, 2, 3, 1)).astype(jnp.bfloat16)             # one-time NHWC + bf16
    x = conv2d_relu(x, params["conv1_w"], params["conv1_b"], 8, 8, 4)   # (N, 20, 20, 32)
    x = conv2d_relu(x, params["conv2_w"], params["conv2_b"], 4, 4, 2)   # (N, 9, 9, 64)
    x = conv2d_relu(x, params["conv3_w"], params["conv3_b"], 3, 3, 1)   # (N, 7, 7, 64)
    x = x.reshape(x.shape[0], -1)          # NHWC flatten; fc4_w columns pre-permuted to match torch
    return fc_tail(x, params["fc4_w"], params["fc4_b"],
                   params["fc5_w"], params["fc5_b"])


def net_reference(tp, x):
    """Pure-JAX f32 reference with torch layouts (validation only)."""
    def conv(x, w, b, s):
        y = jax.lax.conv_general_dilated(
            x, w, (s, s), "VALID", dimension_numbers=("NCHW", "OIHW", "NCHW"))
        return jax.nn.relu(y + b[None, :, None, None])
    x = conv(x, tp["conv1_w"], tp["conv1_b"], 4)
    x = conv(x, tp["conv2_w"], tp["conv2_b"], 2)
    x = conv(x, tp["conv3_w"], tp["conv3_b"], 1)
    x = x.reshape(x.shape[0], -1)
    x = jax.nn.relu(x @ tp["fc4_w"].T + tp["fc4_b"])
    return x @ tp["fc5_w"].T + tp["fc5_b"]


if __name__ == "__main__":
    OUTPUT = 6
    key = jax.random.PRNGKey(0)
    k_param, k_x = jax.random.split(key)
    torch_params = init_torch_params(k_param, OUTPUT)
    params = prepare_params(torch_params)          # one-time layout / pad / bf16 transform
    # fc4 expects 7*7*64 flattened features, which pins the input to (N, 4, 84, 84).
    x = jax.random.normal(k_x, (2, 4, 84, 84), jnp.float32)

    y = jax.jit(net_forward)(params, x)
    jax.block_until_ready(y)
    assert y.shape == (2, OUTPUT) and y.dtype == jnp.float32
    assert bool(jnp.all(jnp.isfinite(y)))

    # Loose check vs. an f32 reference (kernels use bf16 operands, f32 accumulation).
    y_ref = jax.jit(net_reference)(torch_params, x)
    assert bool(jnp.allclose(y, y_ref, rtol=5e-2, atol=1e-2)), \
        float(jnp.max(jnp.abs(y - y_ref)))

    print("KERNEL_OK")
</pallas_src>

<mosaic_0001>
module attributes {stable_mosaic.version = 11 : i64} {
  func.func @_matmul_bias_relu_kernel(%arg0: i32, %arg1: memref<160x256xbf16, #tpu.memory_space<vmem>>, %arg2: memref<256x32xbf16, #tpu.memory_space<vmem>>, %arg3: memref<1x32xf32, #tpu.memory_space<vmem>>, %arg4: memref<160x32xbf16, #tpu.memory_space<vmem>>) attributes {dimension_semantics = [#tpu.dimension_semantics<parallel>], iteration_bounds = array<i64: 5>, scalar_prefetch = 0 : i64, scratch_operands = 0 : i64, tpu.core_type = #tpu.core_type<tc>, window_params = [{transform_indices = @transform_0, window_bounds = array<i64: 160, 256>}, {pipeline_mode = #tpu.pipeline_mode<synchronous>, transform_indices = @transform_1, window_bounds = array<i64: 256, 32>}, {pipeline_mode = #tpu.pipeline_mode<synchronous>, transform_indices = @transform_2, window_bounds = array<i64: 1, 32>}, {transform_indices = @transform_3, window_bounds = array<i64: 160, 32>}]} {
    %c0 = arith.constant 0 : index
    %c0_0 = arith.constant 0 : index
    %0 = vector.load %arg1[%c0, %c0_0] : memref<160x256xbf16, #tpu.memory_space<vmem>>, vector<160x256xbf16>
    %c0_1 = arith.constant 0 : index
    %c0_2 = arith.constant 0 : index
    %1 = vector.load %arg2[%c0_1, %c0_2] : memref<256x32xbf16, #tpu.memory_space<vmem>>, vector<256x32xbf16>
    %cst = arith.constant dense<0.000000e+00> : vector<160x32xf32>
    %2 = tpu.matmul %0, %1, %cst {dimension_numbers = #tpu.dot_dimension_numbers<[1], [0], [0], [1], [0, 0, 1, 1], [], []>} : vector<160x256xbf16>, vector<256x32xbf16>, vector<160x32xf32> -> vector<160x32xf32>
    %c0_3 = arith.constant 0 : index
    %c0_4 = arith.constant 0 : index
    %3 = vector.load %arg3[%c0_3, %c0_4] : memref<1x32xf32, #tpu.memory_space<vmem>>, vector<1x32xf32>
    %4 = vector.broadcast %3 : vector<1x32xf32> to vector<160x32xf32>
    %5 = arith.addf %2, %4 : vector<160x32xf32>
    %cst_5 = arith.constant 0.000000e+00 : f32
    %6 = vector.broadcast %cst_5 : f32 to vector<160x32xf32>
    %7 = arith.maximumf %5, %6 : vector<160x32xf32>
    %8 = arith.truncf %7 : vector<160x32xf32> to vector<160x32xbf16>
    %c0_6 = arith.constant 0 : index
    %c0_7 = arith.constant 0 : index
    %9 = vector.load %arg4[%c0_6, %c0_7] : memref<160x32xbf16, #tpu.memory_space<vmem>>, vector<160x32xbf16>
    tpu.vector_store %arg4[%c0_6, %c0_7], %8 {strides = array<i32>} : memref<160x32xbf16, #tpu.memory_space<vmem>>, vector<160x32xbf16>,
    return
  }
  func.func @transform_0(%arg0: i32) -> (i32, i32) {
    %c0_i32 = arith.constant 0 : i32
    %c0_i32_0 = arith.constant 0 : i32
    return %arg0, %c0_i32 : i32, i32
  }
  func.func @transform_1(%arg0: i32) -> (i32, i32) {
    %c0_i32 = arith.constant 0 : i32
    %c0_i32_0 = arith.constant 0 : i32
    %c0_i32_1 = arith.constant 0 : i32
    return %c0_i32, %c0_i32_0 : i32, i32
  }
  func.func @transform_2(%arg0: i32) -> (i32, i32) {
    %c0_i32 = arith.constant 0 : i32
    %c0_i32_0 = arith.constant 0 : i32
    %c0_i32_1 = arith.constant 0 : i32
    return %c0_i32, %c0_i32_0 : i32, i32
  }
  func.func @transform_3(%arg0: i32) -> (i32, i32) {
    %c0_i32 = arith.constant 0 : i32
    %c0_i32_0 = arith.constant 0 : i32
    return %arg0, %c0_i32 : i32, i32
  }
}

module attributes {stable_mosaic.version = 11 : i64} {
  func.func @_matmul_bias_relu_kernel(%arg0: i32, %arg1: memref<162x512xbf16, #tpu.memory_space<vmem>>, %arg2: memref<512x64xbf16, #tpu.memory_space<vmem>>, %arg3: memref<1x64xf32, #tpu.memory_space<vmem>>, %arg4: memref<162x64xbf16, #tpu.memory_space<vmem>>) attributes {dimension_semantics = [#tpu.dimension_semantics<parallel>], iteration_bounds = array<i64: 1>, scalar_prefetch = 0 : i64, scratch_operands = 0 : i64, tpu.core_type = #tpu.core_type<tc>, window_params = [{transform_indices = @transform_0, window_bounds = array<i64: 162, 512>}, {pipeline_mode = #tpu.pipeline_mode<synchronous>, transform_indices = @transform_1, window_bounds = array<i64: 512, 64>}, {pipeline_mode = #tpu.pipeline_mode<synchronous>, transform_indices = @transform_2, window_bounds = array<i64: 1, 64>}, {transform_indices = @transform_3, window_bounds = array<i64: 162, 64>}]} {
    %c0 = arith.constant 0 : index
    %c0_0 = arith.constant 0 : index
    %0 = vector.load %arg1[%c0, %c0_0] : memref<162x512xbf16, #tpu.memory_space<vmem>>, vector<162x512xbf16>
    %c0_1 = arith.constant 0 : index
    %c0_2 = arith.constant 0 : index
    %1 = vector.load %arg2[%c0_1, %c0_2] : memref<512x64xbf16, #tpu.memory_space<vmem>>, vector<512x64xbf16>
    %cst = arith.constant dense<0.000000e+00> : vector<162x64xf32>
    %2 = tpu.matmul %0, %1, %cst {dimension_numbers = #tpu.dot_dimension_numbers<[1], [0], [0], [1], [0, 0, 1, 1], [], []>} : vector<162x512xbf16>, vector<512x64xbf16>, vector<162x64xf32> -> vector<162x64xf32>
    %c0_3 = arith.constant 0 : index
    %c0_4 = arith.constant 0 : index
    %3 = vector.load %arg3[%c0_3, %c0_4] : memref<1x64xf32, #tpu.memory_space<vmem>>, vector<1x64xf32>
    %4 = vector.broadcast %3 : vector<1x64xf32> to vector<162x64xf32>
    %5 = arith.addf %2, %4 : vector<162x64xf32>
    %cst_5 = arith.constant 0.000000e+00 : f32
    %6 = vector.broadcast %cst_5 : f32 to vector<162x64xf32>
    %7 = arith.maximumf %5, %6 : vector<162x64xf32>
    %8 = arith.truncf %7 : vector<162x64xf32> to vector<162x64xbf16>
    %c0_6 = arith.constant 0 : index
    %c0_7 = arith.constant 0 : index
    %9 = vector.load %arg4[%c0_6, %c0_7] : memref<162x64xbf16, #tpu.memory_space<vmem>>, vector<162x64xbf16>
    tpu.vector_store %arg4[%c0_6, %c0_7], %8 {strides = array<i32>} : memref<162x64xbf16, #tpu.memory_space<vmem>>, vector<162x64xbf16>,
    return
  }
  func.func @transform_0(%arg0: i32) -> (i32, i32) {
    %c0_i32 = arith.constant 0 : i32
    %c0_i32_0 = arith.constant 0 : i32
    return %arg0, %c0_i32 : i32, i32
  }
  func.func @transform_1(%arg0: i32) -> (i32, i32) {
    %c0_i32 = arith.constant 0 : i32
    %c0_i32_0 = arith.constant 0 : i32
    %c0_i32_1 = arith.constant 0 : i32
    return %c0_i32, %c0_i32_0 : i32, i32
  }
  func.func @transform_2(%arg0: i32) -> (i32, i32) {
    %c0_i32 = arith.constant 0 : i32
    %c0_i32_0 = arith.constant 0 : i32
    %c0_i32_1 = arith.constant 0 : i32
    return %c0_i32, %c0_i32_0 : i32, i32
  }
  func.func @transform_3(%arg0: i32) -> (i32, i32) {
    %c0_i32 = arith.constant 0 : i32
    %c0_i32_0 = arith.constant 0 : i32
    return %arg0, %c0_i32 : i32, i32
  }
}

module attributes {stable_mosaic.version = 11 : i64} {
  func.func @_matmul_bias_relu_kernel(%arg0: i32, %arg1: memref<98x576xbf16, #tpu.memory_space<vmem>>, %arg2: memref<576x64xbf16, #tpu.memory_space<vmem>>, %arg3: memref<1x64xf32, #tpu.memory_space<vmem>>, %arg4: memref<98x64xbf16, #tpu.memory_space<vmem>>) attributes {dimension_semantics = [#tpu.dimension_semantics<parallel>], iteration_bounds = array<i64: 1>, scalar_prefetch = 0 : i64, scratch_operands = 0 : i64, tpu.core_type = #tpu.core_type<tc>, window_params = [{transform_indices = @transform_0, window_bounds = array<i64: 98, 576>}, {pipeline_mode = #tpu.pipeline_mode<synchronous>, transform_indices = @transform_1, window_bounds = array<i64: 576, 64>}, {pipeline_mode = #tpu.pipeline_mode<synchronous>, transform_indices = @transform_2, window_bounds = array<i64: 1, 64>}, {transform_indices = @transform_3, window_bounds = array<i64: 98, 64>}]} {
    %c0 = arith.constant 0 : index
    %c0_0 = arith.constant 0 : index
    %0 = vector.load %arg1[%c0, %c0_0] : memref<98x576xbf16, #tpu.memory_space<vmem>>, vector<98x576xbf16>
    %c0_1 = arith.constant 0 : index
    %c0_2 = arith.constant 0 : index
    %1 = vector.load %arg2[%c0_1, %c0_2] : memref<576x64xbf16, #tpu.memory_space<vmem>>, vector<576x64xbf16>
    %cst = arith.constant dense<0.000000e+00> : vector<98x64xf32>
    %2 = tpu.matmul %0, %1, %cst {dimension_numbers = #tpu.dot_dimension_numbers<[1], [0], [0], [1], [0, 0, 1, 1], [], []>} : vector<98x576xbf16>, vector<576x64xbf16>, vector<98x64xf32> -> vector<98x64xf32>
    %c0_3 = arith.constant 0 : index
    %c0_4 = arith.constant 0 : index
    %3 = vector.load %arg3[%c0_3, %c0_4] : memref<1x64xf32, #tpu.memory_space<vmem>>, vector<1x64xf32>
    %4 = vector.broadcast %3 : vector<1x64xf32> to vector<98x64xf32>
    %5 = arith.addf %2, %4 : vector<98x64xf32>
    %cst_5 = arith.constant 0.000000e+00 : f32
    %6 = vector.broadcast %cst_5 : f32 to vector<98x64xf32>
    %7 = arith.maximumf %5, %6 : vector<98x64xf32>
    %8 = arith.truncf %7 : vector<98x64xf32> to vector<98x64xbf16>
    %c0_6 = arith.constant 0 : index
    %c0_7 = arith.constant 0 : index
    %9 = vector.load %arg4[%c0_6, %c0_7] : memref<98x64xbf16, #tpu.memory_space<vmem>>, vector<98x64xbf16>
    tpu.vector_store %arg4[%c0_6, %c0_7], %8 {strides = array<i32>} : memref<98x64xbf16, #tpu.memory_space<vmem>>, vector<98x64xbf16>,
    return
  }
  func.func @transform_0(%arg0: i32) -> (i32, i32) {
    %c0_i32 = arith.constant 0 : i32
    %c0_i32_0 = arith.constant 0 : i32
    return %arg0, %c0_i32 : i32, i32
  }
  func.func @transform_1(%arg0: i32) -> (i32, i32) {
    %c0_i32 = arith.constant 0 : i32
    %c0_i32_0 = arith.constant 0 : i32
    %c0_i32_1 = arith.constant 0 : i32
    return %c0_i32, %c0_i32_0 : i32, i32
  }
  func.func @transform_2(%arg0: i32) -> (i32, i32) {
    %c0_i32 = arith.constant 0 : i32
    %c0_i32_0 = arith.constant 0 : i32
    %c0_i32_1 = arith.constant 0 : i32
    return %c0_i32, %c0_i32_0 : i32, i32
  }
  func.func @transform_3(%arg0: i32) -> (i32, i32) {
    %c0_i32 = arith.constant 0 : i32
    %c0_i32_0 = arith.constant 0 : i32
    return %arg0, %c0_i32 : i32, i32
  }
}

module attributes {stable_mosaic.version = 11 : i64} {
  func.func @_fc_tail_kernel(%arg0: i32, %arg1: memref<2x640xbf16, #tpu.memory_space<vmem>>, %arg2: memref<640x512xbf16, #tpu.memory_space<vmem>>, %arg3: memref<1x512xf32, #tpu.memory_space<vmem>>, %arg4: memref<512x6xbf16, #tpu.memory_space<vmem>>, %arg5: memref<1x6xf32, #tpu.memory_space<vmem>>, %arg6: memref<2x6xf32, #tpu.memory_space<vmem>>, %arg7: memref<2x512xf32, #tpu.memory_space<vmem>>) attributes {dimension_semantics = [#tpu.dimension_semantics<arbitrary>], iteration_bounds = array<i64: 5>, scalar_prefetch = 0 : i64, scratch_operands = 1 : i64, tpu.core_type = #tpu.core_type<tc>, window_params = [{transform_indices = @transform_0, window_bounds = array<i64: 2, 640>}, {transform_indices = @transform_1, window_bounds = array<i64: 640, 512>}, {pipeline_mode = #tpu.pipeline_mode<synchronous>, transform_indices = @transform_2, window_bounds = array<i64: 1, 512>}, {pipeline_mode = #tpu.pipeline_mode<synchronous>, transform_indices = @transform_3, window_bounds = array<i64: 512, 6>}, {pipeline_mode = #tpu.pipeline_mode<synchronous>, transform_indices = @transform_4, window_bounds = array<i64: 1, 6>}, {pipeline_mode = #tpu.pipeline_mode<synchronous>, transform_indices = @transform_5, window_bounds = array<i64: 2, 6>}]} {
    %c0_i32 = arith.constant 0 : i32
    %0 = arith.cmpi eq, %arg0, %c0_i32 : i32
    %1 = arith.extui %0 : i1 to i32
    %c0_i32_0 = arith.constant 0 : i32
    %2 = arith.cmpi ne, %1, %c0_i32_0 : i32
    scf.if %2 {
      %cst_9 = arith.constant 0.000000e+00 : f32
      %12 = vector.broadcast %cst_9 : f32 to vector<2x512xf32>
      %c0_10 = arith.constant 0 : index
      %c0_11 = arith.constant 0 : index
      %13 = vector.load %arg7[%c0_10, %c0_11] : memref<2x512xf32, #tpu.memory_space<vmem>>, vector<2x512xf32>
      tpu.vector_store %arg7[%c0_10, %c0_11], %12 {strides = array<i32>} : memref<2x512xf32, #tpu.memory_space<vmem>>, vector<2x512xf32>,
    } else {
    }
    %c0 = arith.constant 0 : index
    %c0_1 = arith.constant 0 : index
    %3 = vector.load %arg7[%c0, %c0_1] : memref<2x512xf32, #tpu.memory_space<vmem>>, vector<2x512xf32>
    %c0_2 = arith.constant 0 : index
    %c0_3 = arith.constant 0 : index
    %4 = vector.load %arg1[%c0_2, %c0_3] : memref<2x640xbf16, #tpu.memory_space<vmem>>, vector<2x640xbf16>
    %c0_4 = arith.constant 0 : index
    %c0_5 = arith.constant 0 : index
    %5 = vector.load %arg2[%c0_4, %c0_5] : memref<640x512xbf16, #tpu.memory_space<vmem>>, vector<640x512xbf16>
    %cst = arith.constant dense<0.000000e+00> : vector<2x512xf32>
    %6 = tpu.matmul %4, %5, %cst {dimension_numbers = #tpu.dot_dimension_numbers<[1], [0], [0], [1], [0, 0, 1, 1], [], []>} : vector<2x640xbf16>, vector<640x512xbf16>, vector<2x512xf32> -> vector<2x512xf32>
    %7 = arith.addf %3, %6 : vector<2x512xf32>
    %c0_6 = arith.constant 0 : index
    %c0_7 = arith.constant 0 : index
    %8 = vector.load %arg7[%c0_6, %c0_7] : memref<2x512xf32, #tpu.memory_space<vmem>>, vector<2x512xf32>
    tpu.vector_store %arg7[%c0_6, %c0_7], %7 {strides = array<i32>} : memref<2x512xf32, #tpu.memory_space<vmem>>, vector<2x512xf32>,
    %c4_i32 = arith.constant 4 : i32
    %9 = arith.cmpi eq, %arg0, %c4_i32 : i32
    %10 = arith.extui %9 : i1 to i32
    %c0_i32_8 = arith.constant 0 : i32
    %11 = arith.cmpi ne, %10, %c0_i32_8 : i32
    scf.if %11 {
      %c0_9 = arith.constant 0 : index
      %c0_10 = arith.constant 0 : index
      %12 = vector.load %arg7[%c0_9, %c0_10] : memref<2x512xf32, #tpu.memory_space<vmem>>, vector<2x512xf32>
      %c0_11 = arith.constant 0 : index
      %c0_12 = arith.constant 0 : index
      %13 = vector.load %arg3[%c0_11, %c0_12] : memref<1x512xf32, #tpu.memory_space<vmem>>, vector<1x512xf32>
      %14 = vector.broadcast %13 : vector<1x512xf32> to vector<2x512xf32>
      %15 = arith.addf %12, %14 : vector<2x512xf32>
      %cst_13 = arith.constant 0.000000e+00 : f32
      %16 = vector.broadcast %cst_13 : f32 to vector<2x512xf32>
      %17 = arith.maximumf %15, %16 : vector<2x512xf32>
      %18 = arith.truncf %17 : vector<2x512xf32> to vector<2x512xbf16>
      %c0_14 = arith.constant 0 : index
      %c0_15 = arith.constant 0 : index
      %19 = vector.load %arg4[%c0_14, %c0_15] : memref<512x6xbf16, #tpu.memory_space<vmem>>, vector<512x6xbf16>
      %cst_16 = arith.constant dense<0.000000e+00> : vector<2x6xf32>
      %20 = tpu.matmul %18, %19, %cst_16 {dimension_numbers = #tpu.dot_dimension_numbers<[1], [0], [0], [1], [0, 0, 1, 1], [], []>} : vector<2x512xbf16>, vector<512x6xbf16>, vector<2x6xf32> -> vector<2x6xf32>
      %c0_17 = arith.constant 0 : index
      %c0_18 = arith.constant 0 : index
      %21 = vector.load %arg5[%c0_17, %c0_18] : memref<1x6xf32, #tpu.memory_space<vmem>>, vector<1x6xf32>
      %22 = vector.broadcast %21 : vector<1x6xf32> to vector<2x6xf32>
      %23 = arith.addf %20, %22 : vector<2x6xf32>
      %c0_19 = arith.constant 0 : index
      %c0_20 = arith.constant 0 : index
      %24 = vector.load %arg6[%c0_19, %c0_20] : memref<2x6xf32, #tpu.memory_space<vmem>>, vector<2x6xf32>
      tpu.vector_store %arg6[%c0_19, %c0_20], %23 {strides = array<i32>} : memref<2x6xf32, #tpu.memory_space<vmem>>, vector<2x6xf32>,
    } else {
    }
    return
  }
  func.func @transform_0(%arg0: i32) -> (i32, i32) {
    %c0_i32 = arith.constant 0 : i32
    %c0_i32_0 = arith.constant 0 : i32
    return %c0_i32, %arg0 : i32, i32
  }
  func.func @transform_1(%arg0: i32) -> (i32, i32) {
    %c0_i32 = arith.constant 0 : i32
    %c0_i32_0 = arith.constant 0 : i32
    return %arg0, %c0_i32 : i32, i32
  }
  func.func @transform_2(%arg0: i32) -> (i32, i32) {
    %c0_i32 = arith.constant 0 : i32
    %c0_i32_0 = arith.constant 0 : i32
    %c0_i32_1 = arith.constant 0 : i32
    return %c0_i32, %c0_i32_0 : i32, i32
  }
  func.func @transform_3(%arg0: i32) -> (i32, i32) {
    %c0_i32 = arith.constant 0 : i32
    %c0_i32_0 = arith.constant 0 : i32
    %c0_i32_1 = arith.constant 0 : i32
    return %c0_i32, %c0_i32_0 : i32, i32
  }
  func.func @transform_4(%arg0: i32) -> (i32, i32) {
    %c0_i32 = arith.constant 0 : i32
    %c0_i32_0 = arith.constant 0 : i32
    %c0_i32_1 = arith.constant 0 : i32
    return %c0_i32, %c0_i32_0 : i32, i32
  }
  func.func @transform_5(%arg0: i32) -> (i32, i32) {
    %c0_i32 = arith.constant 0 : i32
    %c0_i32_0 = arith.constant 0 : i32
    %c0_i32_1 = arith.constant 0 : i32
    return %c0_i32, %c0_i32_0 : i32, i32
  }
}

</mosaic_0001>

<bundles_post_ra>
// kernel: net_forward.4
= control target key start
LH: loop header
LB: loop body
LE: loop exit
PB: predicated region body
PF: predicated region fallthrough
CT: control target
= control target key end

     0   :  { %s985_s12 = smov 0   ;;  %s1143_s0 = inlined_call_operand.vmem [shape: bf16[800,256], index: 0, kind: input, shape index: {}]   ;;  %s1144_s1 = inlined_call_operand.vmem [shape: bf16[256,32], index: 1, kind: input, shape index: {}]   ;;  %s1145_s2 = inlined_call_operand.vmem [shape: f32[1,32], index: 2, kind: input, shape index: {}]   ;;  %s1146_s3 = inlined_call_operand.vmem [shape: bf16[800,32], index: 3, kind: output, shape index: {}]  }
   0x1 LB: > { %s723_s13 = sadd.s32 4294967295, %s963_s12   ;;  %p727_p0 = scmp.ge.s32.totalorder %s963_s12, 1  ;;  %s963_s12 = sphi %s985_s12, %s13_s12  }
   0x2   : > { %p139_p1 = scmp.lt.s32.totalorder %s963_s12, 6 }
   0x4   : > { %p140_p2 = pnand %p727_p0, %p139_p1 }
   0x5   : > { %s164_s16 = smul.u32 (!%p140_p2), 20, %s723_s13 }
   0x6   : > { %143 = sbr.rel (%p140_p2) target bundleno = 284 (0x11c), region = 32 }
   0x7   : > { %p165_p3 = scmp.lt.s32.totalorder (!%p140_p2), %s164_s16, 99 }
   0xb   : > { %v911_v0 = vld [vmem:[%s1144_s1 + $0x78] sm:$0xff]   ;;  %v913_v2 = vld [vmem:[%s1144_s1 + $0x70] sm:$0xff]   ;;  %v915_v4 = vld [vmem:[%s1144_s1 + $0x68] sm:$0xff]   ;;  %s1148_s16 = smov (!%p165_p3, %s164_s16), 99  ;;  %vm646_vm0 = vcmask 257024  }
   0xc   : > { %v912_v1 = vld [vmem:[%s1144_s1 + $0x38] sm:$0xff]   ;;  %811 = vmatprep.subr.bf16.mxu0 %v911_v0  ;;  %887 = vmatprep.subr.bf16.mxu1 %v911_v0  ;;  %v914_v3 = vld [vmem:[%s1144_s1 + $0x30] sm:$0xff]   ;;  %v916_v5 = vld [vmem:[%s1144_s1 + $0x28] sm:$0xff]   ;;  %s790_s4 = sshll.u32 %s1148_s16, 3  ;;  %s730_s28 = sshll.u32 %s1148_s16, 2 }
   0xd   : > { %812 = vmatpush3.bf16.msra.mxu0 %v912_v1  ;;  %895 = vmatpush3.bf16.msra.mxu1 %v912_v1  ;;  %v917_v6 = vld [vmem:[%s1144_s1 + $0x60] sm:$0xff]   ;;  %v919_v8 = vld [vmem:[%s1144_s1 + $0x58] sm:$0xff]   ;;  %s1026_s9 = scalar_lea.vmem %s1143_s0, %s790_s4  ;;  %v921_v10 = vld [vmem:[%s1144_s1 + $0x50] sm:$0xff]   ;;  %s1080_s4 = scalar_lea.vmem %s1146_s3, %s730_s28 }
   0xe   : > { %813 = vmatprep.subr.bf16.mxu0 %v913_v2  ;;  %888 = vmatprep.subr.bf16.mxu1 %v913_v2  ;;  %v918_v7 = vld [vmem:[%s1144_s1 + $0x20] sm:$0xff]   ;;  %v920_v9 = vld [vmem:[%s1144_s1 + $0x18] sm:$0xff]   ;;  %v922_v13 = vld [vmem:[%s1144_s1 + $0x10] sm:$0xff]  }
   0xf   : > { %v929_v11 = vld [vmem:[%s1026_s9 + $0x4] ss:$8 sps:$4 sm:$0xff]   ;;  %v932_v12 = vld [vmem:[%s1026_s9 + $0x54] ss:$8 sps:$4 sm:$0xff]   ;;  %v927_v18 = vld [vmem:[%s1026_s9] ss:$8 sps:$4 sm:$0xff]  }
  0x10   : > { %v923_v14 = vld [vmem:[%s1144_s1 + $0x48] sm:$0xff]   ;;  %465 = vmatprep.mubr.bf16.mxu0 %v929_v11  ;;  %505 = vmatprep.mubr.bf16.mxu1 %v932_v12  ;;  %v925_v16 = vld [vmem:[%s1144_s1 + $0x40] sm:$0xff]   ;;  %v930_v19 = vld [vmem:[%s1026_s9 + $0x50] ss:$8 sps:$4 sm:$0xff]  }
  0x11   : > { %814 = vmatpush3.bf16.msra.mxu0 %v914_v3  ;;  %896 = vmatpush3.bf16.msra.mxu1 %v914_v3  ;;  %v924_v15 = vld [vmem:[%s1144_s1 + $0x8] sm:$0xff]   ;;  %v926_v17 = vld [vmem:[%s1144_s1] sm:$0xff]   ;;  %v933_v20 = vld [vmem:[%s1026_s9 + $0x14] ss:$8 sps:$4 sm:$0xff]  }
  0x12   : > { %815 = vmatprep.subr.bf16.mxu0 %v915_v4  ;;  %889 = vmatprep.subr.bf16.mxu1 %v915_v4  ;;  %v935_v21 = vld [vmem:[%s1026_s9 + $0x64] ss:$8 sps:$4 sm:$0xff]   ;;  %v937_v22 = vld [vmem:[%s1026_s9 + $0x10] ss:$8 sps:$4 sm:$0xff]   ;;  %v938_v23 = vld [vmem:[%s1026_s9 + $0x60] ss:$8 sps:$4 sm:$0xff]  }
  0x13   : > { %v939_v24 = vld [vmem:[%s1026_s9 + $0x24] ss:$8 sps:$4 sm:$0xff]   ;;  %v941_v25 = vld [vmem:[%s1026_s9 + $0x74] ss:$8 sps:$4 sm:$0xff]   ;;  %v943_v26 = vld [vmem:[%s1026_s9 + $0x20] ss:$8 sps:$4 sm:$0xff]  }
  0x14   : > { %v944_v27 = vld [vmem:[%s1026_s9 + $0x70] ss:$8 sps:$4 sm:$0xff]   ;;  %v945_v28 = vld [vmem:[%s1026_s9 + $0x34] ss:$8 sps:$4 sm:$0xff]   ;;  %v947_v29 = vld [vmem:[%s1026_s9 + $0x84] ss:$8 sps:$4 sm:$0xff]  }
  0x15   : > { %816 = vmatpush3.bf16.msra.mxu0 %v916_v5  ;;  %897 = vmatpush3.bf16.msra.mxu1 %v916_v5  ;;  %v949_v30 = vld [vmem:[%s1026_s9 + $0x30] ss:$8 sps:$4 sm:$0xff]   ;;  %v950_v31 = vld [vmem:[%s1026_s9 + $0x80] ss:$8 sps:$4 sm:$0xff]   ;;  %v951_v32 = vld [vmem:[%s1026_s9 + $0x44] ss:$8 sps:$4 sm:$0xff]  }
  0x16   : > { %817 = vmatprep.subr.bf16.mxu0 %v917_v6  ;;  %890 = vmatprep.subr.bf16.mxu1 %v917_v6  ;;  %v953_v33 = vld [vmem:[%s1026_s9 + $0x94] ss:$8 sps:$4 sm:$0xff]   ;;  %v955_v34 = vld [vmem:[%s1026_s9 + $0x40] ss:$8 sps:$4 sm:$0xff]   ;;  %v956_v35 = vld [vmem:[%s1026_s9 + $0x90] ss:$8 sps:$4 sm:$0xff]  }
  0x17   : > { %v1072_v38 = vld [vmem:[%s1145_s2] ss:$0 sm:$0xff] }
  0x19   : > { %818 = vmatpush3.bf16.msra.mxu0 %v918_v7  ;;  %898 = vmatpush3.bf16.msra.mxu1 %v918_v7 }
  0x1a   : > { %819 = vmatprep.subr.bf16.mxu0 %v919_v8  ;;  %891 = vmatprep.subr.bf16.mxu1 %v919_v8 }
  0x1d   : > { %820 = vmatpush3.bf16.msra.mxu0 %v920_v9  ;;  %899 = vmatpush3.bf16.msra.mxu1 %v920_v9 }
  0x1e   : > { %821 = vmatprep.subr.bf16.mxu0 %v921_v10  ;;  %892 = vmatprep.subr.bf16.mxu1 %v921_v10 }
  0x21   : > { %822 = vmatpush3.bf16.msra.mxu0 %v922_v13  ;;  %900 = vmatpush3.bf16.msra.mxu1 %v922_v13 }
  0x22   : > { %823 = vmatprep.subr.bf16.mxu0 %v923_v14  ;;  %893 = vmatprep.subr.bf16.mxu1 %v923_v14 }
  0x25   : > { %824 = vmatpush3.bf16.msra.mxu0 %v924_v15  ;;  %901 = vmatpush3.bf16.msra.mxu1 %v924_v15 }
  0x26   : > { %825 = vmatprep.subr.bf16.mxu0 %v925_v16  ;;  %894 = vmatprep.subr.bf16.mxu1 %v925_v16 }
  0x29   : > { %826 = vmatpush3.bf16.msra.mxu0 %v926_v17  ;;  %902 = vmatpush3.bf16.msra.mxu1 %v926_v17 }
  0x2c   : > { %466 = vmatmul.mubr.bf16.vlgmr.msra.gmra.mxu0 %v927_v18  ;;  %506 = vmatmul.mubr.bf16.vlgmr.msra.gmra.mxu1 %v930_v19 }
  0x2d   : > { %473 = vmatprep.mubr.bf16.mxu0 %v933_v20  ;;  %513 = vmatprep.mubr.bf16.mxu1 %v935_v21 }
  0x34   : > { %474 = vmatmul.mubr.bf16.gmra.mxu0 %v937_v22  ;;  %514 = vmatmul.mubr.bf16.gmra.mxu1 %v938_v23 }
  0x35   : > { %481 = vmatprep.mubr.bf16.mxu0 %v939_v24  ;;  %521 = vmatprep.mubr.bf16.mxu1 %v941_v25 }
  0x3c   : > { %482 = vmatmul.mubr.bf16.gmra.mxu0 %v943_v26  ;;  %522 = vmatmul.mubr.bf16.gmra.mxu1 %v944_v27 }
  0x3d   : > { %489 = vmatprep.mubr.bf16.mxu0 %v945_v28  ;;  %529 = vmatprep.mubr.bf16.mxu1 %v947_v29 }
  0x44   : > { %490 = vmatmul.mubr.bf16.gmra.mxu0 %v949_v30  ;;  %530 = vmatmul.mubr.bf16.gmra.mxu1 %v950_v31 }
  0x45   : > { %497 = vmatprep.mubr.bf16.mxu0 %v951_v32  ;;  %537 = vmatprep.mubr.bf16.mxu1 %v953_v33 }
  0x4c   : > { %498 = vmatmul.mubr.bf16.gmra.mxu0 %v955_v34  ;;  %538 = vmatmul.mubr.bf16.gmra.mxu1 %v956_v35 }
  0xec   : > { %v827_v36 = vpop.f32.mrf.mxu0  ;;  %v857_v37 = vpop.f32.mrf.mxu1 }
  0xee   : > { %v828_v39 = vpop.f32.mrf.mxu0  ;;  %v858_v40 = vpop.f32.mrf.mxu1 }
  0xef   : > { %v829_v41 = vadd.f32 %v828_v39, %v827_v36  ;;  %v859_v42 = vadd.f32 %v858_v40, %v857_v37 }
  0xf0   : > { %v830_v43 = vpop.f32.mrf.mxu0  ;;  %v860_v44 = vpop.f32.mrf.mxu1 }
  0xf1   : > { %v468_v45 = vadd.f32 %v829_v41, %v1072_v38  ;;  %v508_v46 = vadd.f32 %v859_v42, %v1072_v38 }
  0xf2   : > { %v831_v47 = vpop.f32.mrf.mxu0  ;;  %v861_v48 = vpop.f32.mrf.mxu1 }
  0xf3   : > { %v546_v49 = vmax.f32 %v468_v45, 0.0  ;;  %v556_v50 = vmax.f32 %v508_v46, 0.0  ;;  %v832_v51 = vadd.f32 %v831_v47, %v830_v43  ;;  %v862_v52 = vadd.f32 %v861_v48, %v860_v44 }
  0xf4   : > { %v833_v53 = vpop.f32.mrf.mxu0  ;;  %v863_v54 = vpop.f32.mrf.mxu1 }
  0xf5   : > { %v791_v55 = vpack.c.bf16 %v546_v49, %v546_v49  ;;  %v801_v56 = vpack.c.bf16 %v556_v50, %v556_v50  ;;  %v471_v57 = vadd.f32 %v832_v51, %v1072_v38  ;;  %v511_v58 = vadd.f32 %v862_v52, %v1072_v38 }
  0xf6   : > { %v834_v59 = vpop.f32.mrf.mxu0  ;;  %v864_v60 = vpop.f32.mrf.mxu1 }
  0xf7   : > { %647 = vst.msk [vmem:[%s1080_s4] sm:$0xf] %vm646_vm0, %v791_v55  ;;  %657 = vst.msk [vmem:[%s1080_s4 + $0x28] sm:$0xf] %vm646_vm0, %v801_v56  ;;  %v547_v61 = vmax.f32 %v471_v57, 0.0  ;;  %v557_v62 = vmax.f32 %v511_v58, 0.0  ;;  %v835_v63 = vadd.f32 %v834_v59, %v833_v53  ;;  %v865_v0 = vadd.f32 %v864_v60, %v863_v54 }
  0xf8   : > { %v836_v1 = vpop.f32.mrf.mxu0  ;;  %v866_v2 = vpop.f32.mrf.mxu1 }
  0xf9   : > { %v792_v3 = vpack.c.bf16 %v547_v61, %v547_v61  ;;  %v802_v4 = vpack.c.bf16 %v557_v62, %v557_v62  ;;  %v476_v5 = vadd.f32 %v835_v63, %v1072_v38  ;;  %v516_v6 = vadd.f32 %v865_v0, %v1072_v38 }
  0xfa   : > { %v837_v7 = vpop.f32.mrf.mxu0  ;;  %v867_v8 = vpop.f32.mrf.mxu1 }
  0xfb   : > { %648 = vst.msk [vmem:[%s1080_s4 + $0x4] sm:$0xf] %vm646_vm0, %v792_v3  ;;  %658 = vst.msk [vmem:[%s1080_s4 + $0x2c] sm:$0xf] %vm646_vm0, %v802_v4  ;;  %v548_v9 = vmax.f32 %v476_v5, 0.0  ;;  %v558_v10 = vmax.f32 %v516_v6, 0.0  ;;  %v838_v11 = vadd.f32 %v837_v7, %v836_v1  ;;  %v868_v12 = vadd.f32 %v867_v8, %v866_v2 }
  0xfc   : > { %v839_v13 = vpop.f32.mrf.mxu0  ;;  %v869_v14 = vpop.f32.mrf.mxu1 }
  0xfd   : > { %v793_v15 = vpack.c.bf16 %v548_v9, %v548_v9  ;;  %v803_v16 = vpack.c.bf16 %v558_v10, %v558_v10  ;;  %v479_v17 = vadd.f32 %v838_v11, %v1072_v38  ;;  %v519_v18 = vadd.f32 %v868_v12, %v1072_v38 }
  0xfe   : > { %v840_v19 = vpop.f32.mrf.mxu0  ;;  %v870_v20 = vpop.f32.mrf.mxu1 }
  0xff   : > { %649 = vst.msk [vmem:[%s1080_s4 + $0x8] sm:$0xf] %vm646_vm0, %v793_v15  ;;  %659 = vst.msk [vmem:[%s1080_s4 + $0x30] sm:$0xf] %vm646_vm0, %v803_v16  ;;  %v549_v21 = vmax.f32 %v479_v17, 0.0  ;;  %v559_v22 = vmax.f32 %v519_v18, 0.0  ;;  %v841_v23 = vadd.f32 %v840_v19, %v839_v13  ;;  %v871_v24 = vadd.f32 %v870_v20, %v869_v14 }
 0x100   : > { %v842_v25 = vpop.f32.mrf.mxu0  ;;  %v872_v26 = vpop.f32.mrf.mxu1 }
 0x101   : > { %v794_v27 = vpack.c.bf16 %v549_v21, %v549_v21  ;;  %v804_v28 = vpack.c.bf16 %v559_v22, %v559_v22  ;;  %v484_v29 = vadd.f32 %v841_v23, %v1072_v38  ;;  %v524_v30 = vadd.f32 %v871_v24, %v1072_v38 }
 0x102   : > { %v843_v31 = vpop.f32.mrf.mxu0  ;;  %v873_v32 = vpop.f32.mrf.mxu1 }
 0x103   : > { %650 = vst.msk [vmem:[%s1080_s4 + $0xc] sm:$0xf] %vm646_vm0, %v794_v27  ;;  %660 = vst.msk [vmem:[%s1080_s4 + $0x34] sm:$0xf] %vm646_vm0, %v804_v28  ;;  %v550_v33 = vmax.f32 %v484_v29, 0.0  ;;  %v560_v34 = vmax.f32 %v524_v30, 0.0  ;;  %v844_v35 = vadd.f32 %v843_v31, %v842_v25  ;;  %v874_v36 = vadd.f32 %v873_v32, %v872_v26 }
 0x104   : > { %v845_v37 = vpop.f32.mrf.mxu0  ;;  %v875_v39 = vpop.f32.mrf.mxu1 }
 0x105   : > { %v795_v40 = vpack.c.bf16 %v550_v33, %v550_v33  ;;  %v805_v41 = vpack.c.bf16 %v560_v34, %v560_v34  ;;  %v487_v42 = vadd.f32 %v844_v35, %v1072_v38  ;;  %v527_v43 = vadd.f32 %v874_v36, %v1072_v38 }
 0x106   : > { %v846_v44 = vpop.f32.mrf.mxu0  ;;  %v876_v45 = vpop.f32.mrf.mxu1 }
 0x107   : > { %651 = vst.msk [vmem:[%s1080_s4 + $0x10] sm:$0xf] %vm646_vm0, %v795_v40  ;;  %661 = vst.msk [vmem:[%s1080_s4 + $0x38] sm:$0xf] %vm646_vm0, %v805_v41  ;;  %v551_v46 = vmax.f32 %v487_v42, 0.0  ;;  %v561_v47 = vmax.f32 %v527_v43, 0.0  ;;  %v847_v48 = vadd.f32 %v846_v44, %v845_v37  ;;  %v877_v49 = vadd.f32 %v876_v45, %v875_v39 }
 0x108   : > { %v848_v50 = vpop.f32.mrf.mxu0  ;;  %v878_v51 = vpop.f32.mrf.mxu1 }
 0x109   : > { %v796_v52 = vpack.c.bf16 %v551_v46, %v551_v46  ;;  %v806_v53 = vpack.c.bf16 %v561_v47, %v561_v47  ;;  %v492_v54 = vadd.f32 %v847_v48, %v1072_v38  ;;  %v532_v55 = vadd.f32 %v877_v49, %v1072_v38 }
 0x10a   : > { %v849_v56 = vpop.f32.mrf.mxu0  ;;  %v879_v57 = vpop.f32.mrf.mxu1 }
 0x10b   : > { %652 = vst.msk [vmem:[%s1080_s4 + $0x14] sm:$0xf] %vm646_vm0, %v796_v52  ;;  %662 = vst.msk [vmem:[%s1080_s4 + $0x3c] sm:$0xf] %vm646_vm0, %v806_v53  ;;  %v552_v58 = vmax.f32 %v492_v54, 0.0  ;;  %v562_v59 = vmax.f32 %v532_v55, 0.0  ;;  %v850_v60 = vadd.f32 %v849_v56, %v848_v50  ;;  %v880_v61 = vadd.f32 %v879_v57, %v878_v51 }
 0x10c   : > { %v851_v62 = vpop.f32.mrf.mxu0  ;;  %v881_v63 = vpop.f32.mrf.mxu1 }
 0x10d   : > { %v797_v0 = vpack.c.bf16 %v552_v58, %v552_v58  ;;  %v807_v1 = vpack.c.bf16 %v562_v59, %v562_v59  ;;  %v495_v2 = vadd.f32 %v850_v60, %v1072_v38  ;;  %v535_v3 = vadd.f32 %v880_v61, %v1072_v38 }
 0x10e   : > { %v852_v4 = vpop.f32.mrf.mxu0  ;;  %v882_v5 = vpop.f32.mrf.mxu1 }
 0x10f   : > { %653 = vst.msk [vmem:[%s1080_s4 + $0x18] sm:$0xf] %vm646_vm0, %v797_v0  ;;  %663 = vst.msk [vmem:[%s1080_s4 + $0x40] sm:$0xf] %vm646_vm0, %v807_v1  ;;  %v553_v6 = vmax.f32 %v495_v2, 0.0  ;;  %v563_v7 = vmax.f32 %v535_v3, 0.0  ;;  %v853_v8 = vadd.f32 %v852_v4, %v851_v62  ;;  %v883_v9 = vadd.f32 %v882_v5, %v881_v63 }
 0x110   : > { %v854_v10 = vpop.f32.mrf.mxu0  ;;  %v884_v11 = vpop.f32.mrf.mxu1 }
 0x111   : > { %v798_v12 = vpack.c.bf16 %v553_v6, %v553_v6  ;;  %v808_v13 = vpack.c.bf16 %v563_v7, %v563_v7  ;;  %v500_v14 = vadd.f32 %v853_v8, %v1072_v38  ;;  %v540_v15 = vadd.f32 %v883_v9, %v1072_v38 }
 0x112   : > { %v855_v16 = vpop.f32.mrf.mxu0  ;;  %v885_v17 = vpop.f32.mrf.mxu1 }
 0x113   : > { %654 = vst.msk [vmem:[%s1080_s4 + $0x1c] sm:$0xf] %vm646_vm0, %v798_v12  ;;  %664 = vst.msk [vmem:[%s1080_s4 + $0x44] sm:$0xf] %vm646_vm0, %v808_v13  ;;  %v554_v18 = vmax.f32 %v500_v14, 0.0  ;;  %v564_v19 = vmax.f32 %v540_v15, 0.0  ;;  %v856_v20 = vadd.f32 %v855_v16, %v854_v10  ;;  %v886_v21 = vadd.f32 %v885_v17, %v884_v11 }
 0x115   : > { %v799_v22 = vpack.c.bf16 %v554_v18, %v554_v18  ;;  %v809_v23 = vpack.c.bf16 %v564_v19, %v564_v19  ;;  %v503_v24 = vadd.f32 %v856_v20, %v1072_v38  ;;  %v543_v25 = vadd.f32 %v886_v21, %v1072_v38 }
 0x117   : > { %655 = vst.msk [vmem:[%s1080_s4 + $0x20] sm:$0xf] %vm646_vm0, %v799_v22  ;;  %665 = vst.msk [vmem:[%s1080_s4 + $0x48] sm:$0xf] %vm646_vm0, %v809_v23  ;;  %v555_v26 = vmax.f32 %v503_v24, 0.0  ;;  %v565_v27 = vmax.f32 %v543_v25, 0.0 }
 0x119   : > { %v800_v28 = vpack.c.bf16 %v555_v26, %v555_v26  ;;  %v810_v29 = vpack.c.bf16 %v565_v27, %v565_v27 }
 0x11b   : > { %656 = vst.msk [vmem:[%s1080_s4 + $0x24] sm:$0xf] %vm646_vm0, %v800_v28  ;;  %666 = vst.msk [vmem:[%s1080_s4 + $0x4c] sm:$0xf] %vm646_vm0, %v810_v29 }
 0x11c PF: > { %s13_s12 = sadd.s32 1, %s963_s12  }
 0x11d   : > { %p10_p4 = scmp.ge.s32.totalorder %s13_s12, 7  }
 0x11f   :  { %12 = sbr.rel (!%p10_p4) target bundleno = 1 (0x1), region = 62 }

// kernel: net_forward.5
= control target key start
LH: loop header
LB: loop body
LE: loop exit
PB: predicated region body
PF: predicated region fallthrough
CT: control target
= control target key end

     0   :  { %vm880_vm0 = vcmask 519168   ;;  %vm901_vm1 = vcmask 516096   ;;  %s1637_s1 = inlined_call_operand.vmem [shape: bf16[512,64], index: 1, kind: input, shape index: {}]   ;;  %s1638_s0 = inlined_call_operand.vmem [shape: bf16[162,512], index: 0, kind: input, shape index: {}]   ;;  %s1639_s2 = inlined_call_operand.vmem [shape: f32[1,64], index: 2, kind: input, shape index: {}]   ;;  %s1640_s3 = inlined_call_operand.vmem [shape: bf16[162,64], index: 3, kind: output, shape index: {}]  }
   0x1   :  { %v1190_v0 = vld [vmem:[%s1637_s1 + $0x78] sm:$0xff]   ;;  %v1194_v4 = vld [vmem:[%s1637_s1 + $0x70] sm:$0xff]   ;;  %v1198_v8 = vld [vmem:[%s1637_s1 + $0x68] sm:$0xff]  }
   0x2   :  { %v1191_v1 = vld [vmem:[%s1637_s1 + $0xf8] sm:$0xff]   ;;  %1026 = vmatprep.subr.bf16.mxu0 %v1190_v0  ;;  %v1195_v5 = vld [vmem:[%s1637_s1 + $0xf0] sm:$0xff]   ;;  %v1199_v9 = vld [vmem:[%s1637_s1 + $0xe8] sm:$0xff]  }
   0x3   :  { %v1192_v2 = vld [vmem:[%s1637_s1 + $0x38] sm:$0xff]   ;;  %1108 = vmatprep.subr.bf16.mxu1 %v1191_v1  ;;  %v1196_v6 = vld [vmem:[%s1637_s1 + $0x30] sm:$0xff]   ;;  %v1200_v10 = vld [vmem:[%s1637_s1 + $0x28] sm:$0xff]  }
   0x4   :  { %v1193_v3 = vld [vmem:[%s1637_s1 + $0xb8] sm:$0xff]   ;;  %1027 = vmatpush3.bf16.msra.mxu0 %v1192_v2  ;;  %v1197_v7 = vld [vmem:[%s1637_s1 + $0xb0] sm:$0xff]   ;;  %v1201_v11 = vld [vmem:[%s1637_s1 + $0xa8] sm:$0xff]  }
   0x5   :  { %1109 = vmatpush3.bf16.msra.mxu1 %v1193_v3  ;;  %1028 = vmatprep.subr.bf16.mxu0 %v1194_v4  ;;  %v1202_v12 = vld [vmem:[%s1637_s1 + $0x60] sm:$0xff]   ;;  %v1206_v16 = vld [vmem:[%s1637_s1 + $0x58] sm:$0xff]   ;;  %v1210_v20 = vld [vmem:[%s1637_s1 + $0x50] sm:$0xff]  }
   0x6   :  { %1110 = vmatprep.subr.bf16.mxu1 %v1195_v5  ;;  %v1203_v13 = vld [vmem:[%s1637_s1 + $0xe0] sm:$0xff]   ;;  %v1207_v17 = vld [vmem:[%s1637_s1 + $0xd8] sm:$0xff]   ;;  %v1211_v21 = vld [vmem:[%s1637_s1 + $0xd0] sm:$0xff]  }
   0x7   :  { %v1204_v14 = vld [vmem:[%s1637_s1 + $0x20] sm:$0xff]   ;;  %v1208_v18 = vld [vmem:[%s1637_s1 + $0x18] sm:$0xff]   ;;  %v1212_v22 = vld [vmem:[%s1637_s1 + $0x10] sm:$0xff]  }
   0x8   :  { %1029 = vmatpush3.bf16.msra.mxu0 %v1196_v6  ;;  %v1205_v15 = vld [vmem:[%s1637_s1 + $0xa0] sm:$0xff]   ;;  %v1209_v19 = vld [vmem:[%s1637_s1 + $0x98] sm:$0xff]   ;;  %v1213_v23 = vld [vmem:[%s1637_s1 + $0x90] sm:$0xff]  }
   0x9   :  { %1111 = vmatpush3.bf16.msra.mxu1 %v1197_v7  ;;  %1030 = vmatprep.subr.bf16.mxu0 %v1198_v8  ;;  %v1214_v24 = vld [vmem:[%s1637_s1 + $0x48] sm:$0xff]   ;;  %v1218_v28 = vld [vmem:[%s1637_s1 + $0x40] sm:$0xff]  }
   0xa   :  { %1112 = vmatprep.subr.bf16.mxu1 %v1199_v9  ;;  %v1215_v25 = vld [vmem:[%s1637_s1 + $0xc8] sm:$0xff]   ;;  %v1219_v29 = vld [vmem:[%s1637_s1 + $0xc0] sm:$0xff]  }
   0xb   :  { %v1216_v26 = vld [vmem:[%s1637_s1 + $0x8] sm:$0xff]   ;;  %v1220_v30 = vld [vmem:[%s1637_s1] sm:$0xff]  }
   0xc   :  { %1031 = vmatpush3.bf16.msra.mxu0 %v1200_v10  ;;  %v1217_v27 = vld [vmem:[%s1637_s1 + $0x88] sm:$0xff]   ;;  %v1221_v31 = vld [vmem:[%s1637_s1 + $0x80] sm:$0xff]  }
   0xd   :  { %1113 = vmatpush3.bf16.msra.mxu1 %v1201_v11  ;;  %1032 = vmatprep.subr.bf16.mxu0 %v1202_v12  ;;  %v1222_v32 = vld [vmem:[%s1638_s0] ss:$16 sps:$4 sm:$0xff]   ;;  %v1224_v33 = vld [vmem:[%s1638_s0 + $0x4] ss:$16 sps:$4 sm:$0xff]   ;;  %v1225_v34 = vld [vmem:[%s1638_s0 + $0x8] ss:$16 sps:$4 sm:$0xff]  }
   0xe   :  { %1114 = vmatprep.subr.bf16.mxu1 %v1203_v13  ;;  %v1227_v35 = vld [vmem:[%s1638_s0 + $0xc] ss:$16 sps:$4 sm:$0xff]   ;;  %566 = vmatprep.mubr.bf16.mxu0 %v1224_v33  ;;  %v1228_v36 = vld [vmem:[%s1638_s0 + $0x24] ss:$16 sps:$4 sm:$0xff]   ;;  %v1232_v38 = vld [vmem:[%s1638_s0 + $0x20] ss:$16 sps:$4 sm:$0xff]  }
   0xf   :  { %686 = vmatprep.mubr.bf16.mxu1 %v1227_v35  ;;  %v1230_v37 = vld [vmem:[%s1638_s0 + $0x2c] ss:$16 sps:$4 sm:$0xff]   ;;  %v1233_v39 = vld [vmem:[%s1638_s0 + $0x28] ss:$16 sps:$4 sm:$0xff]   ;;  %v1234_v40 = vld [vmem:[%s1638_s0 + $0x44] ss:$16 sps:$4 sm:$0xff]  }
  0x10   :  { %1033 = vmatpush3.bf16.msra.mxu0 %v1204_v14  ;;  %v1236_v41 = vld [vmem:[%s1638_s0 + $0x4c] ss:$16 sps:$4 sm:$0xff]   ;;  %v1238_v42 = vld [vmem:[%s1638_s0 + $0x40] ss:$16 sps:$4 sm:$0xff]   ;;  %v1239_v43 = vld [vmem:[%s1638_s0 + $0x48] ss:$16 sps:$4 sm:$0xff]  }
  0x11   :  { %1115 = vmatpush3.bf16.msra.mxu1 %v1205_v15  ;;  %1034 = vmatprep.subr.bf16.mxu0 %v1206_v16  ;;  %v1240_v44 = vld [vmem:[%s1638_s0 + $0x64] ss:$16 sps:$4 sm:$0xff]   ;;  %v1242_v45 = vld [vmem:[%s1638_s0 + $0x6c] ss:$16 sps:$4 sm:$0xff]   ;;  %v1244_v46 = vld [vmem:[%s1638_s0 + $0x60] ss:$16 sps:$4 sm:$0xff]  }
  0x12   :  { %1116 = vmatprep.subr.bf16.mxu1 %v1207_v17  ;;  %v1245_v47 = vld [vmem:[%s1638_s0 + $0x68] ss:$16 sps:$4 sm:$0xff]   ;;  %v1246_v48 = vld [vmem:[%s1638_s0 + $0x84] ss:$16 sps:$4 sm:$0xff]   ;;  %v1248_v49 = vld [vmem:[%s1638_s0 + $0x8c] ss:$16 sps:$4 sm:$0xff]  }
  0x13   :  { %v1250_v50 = vld [vmem:[%s1638_s0 + $0x80] ss:$16 sps:$4 sm:$0xff]   ;;  %v1251_v51 = vld [vmem:[%s1638_s0 + $0x88] ss:$16 sps:$4 sm:$0xff]   ;;  %v1252_v52 = vld [vmem:[%s1638_s0 + $0xa4] ss:$16 sps:$4 sm:$0xff]  }
  0x14   :  { %1035 = vmatpush3.bf16.msra.mxu0 %v1208_v18  ;;  %v1254_v53 = vld [vmem:[%s1638_s0 + $0xac] ss:$16 sps:$4 sm:$0xff]   ;;  %v1256_v54 = vld [vmem:[%s1638_s0 + $0xa0] ss:$16 sps:$4 sm:$0xff]   ;;  %v1257_v55 = vld [vmem:[%s1638_s0 + $0xa8] ss:$16 sps:$4 sm:$0xff]  }
  0x15   :  { %1117 = vmatpush3.bf16.msra.mxu1 %v1209_v19  ;;  %1036 = vmatprep.subr.bf16.mxu0 %v1210_v20  ;;  %v1258_v56 = vld [vmem:[%s1638_s0 + $0xc4] ss:$16 sps:$4 sm:$0xff]   ;;  %v1260_v57 = vld [vmem:[%s1638_s0 + $0xcc] ss:$16 sps:$4 sm:$0xff]   ;;  %v1262_v58 = vld [vmem:[%s1638_s0 + $0xc0] ss:$16 sps:$4 sm:$0xff]  }
  0x16   :  { %1118 = vmatprep.subr.bf16.mxu1 %v1211_v21  ;;  %v1263_v59 = vld [vmem:[%s1638_s0 + $0xc8] ss:$16 sps:$4 sm:$0xff]   ;;  %v1264_v60 = vld [vmem:[%s1638_s0 + $0xe4] ss:$16 sps:$4 sm:$0xff]   ;;  %v1266_v61 = vld [vmem:[%s1638_s0 + $0xec] ss:$16 sps:$4 sm:$0xff]  }
  0x17   :  { %v1268_v62 = vld [vmem:[%s1638_s0 + $0xe0] ss:$16 sps:$4 sm:$0xff]   ;;  %v1269_v63 = vld [vmem:[%s1638_s0 + $0xe8] ss:$16 sps:$4 sm:$0xff]   ;;  %v1270_v0 = vld [vmem:[%s1638_s0 + $0x104] ss:$16 sps:$4 sm:$0xff]  }
  0x18   :  { %1037 = vmatpush3.bf16.msra.mxu0 %v1212_v22  ;;  %v1272_v1 = vld [vmem:[%s1638_s0 + $0x10c] ss:$16 sps:$4 sm:$0xff]   ;;  %v1274_v2 = vld [vmem:[%s1638_s0 + $0x100] ss:$16 sps:$4 sm:$0xff]   ;;  %v1275_v3 = vld [vmem:[%s1638_s0 + $0x108] ss:$16 sps:$4 sm:$0xff]  }
  0x19   :  { %1119 = vmatpush3.bf16.msra.mxu1 %v1213_v23  ;;  %1038 = vmatprep.subr.bf16.mxu0 %v1214_v24  ;;  %v1276_v4 = vld [vmem:[%s1638_s0 + $0x124] ss:$16 sps:$4 sm:$0xff]   ;;  %v1278_v5 = vld [vmem:[%s1638_s0 + $0x12c] ss:$16 sps:$4 sm:$0xff]   ;;  %v1280_v8 = vld [vmem:[%s1638_s0 + $0x120] ss:$16 sps:$4 sm:$0xff]  }
  0x1a   :  { %1120 = vmatprep.subr.bf16.mxu1 %v1215_v25  ;;  %v55_v6 = vld [vmem:[%s1638_s0 + $0x140] sm:$0x11]  ;;  %v56_v7 = vld [vmem:[%s1638_s0 + $0x148] sm:$0x11] }
  0x1b   :  { %v1281_v9 = vld [vmem:[%s1638_s0 + $0x128] ss:$16 sps:$4 sm:$0xff]   ;;  %v949_v10 = vcombine.high %v55_v6, %v55_v6  ;;  %v951_v11 = vcombine.high %v56_v7, %v56_v7  ;;  %v948_v12 = vcombine.low %v55_v6, %v55_v6  ;;  %v950_v13 = vcombine.low %v56_v7, %v56_v7  ;;  %v1531_v16 = vld [vmem:[%s1639_s2] ss:$0 sm:$0xff] }
  0x1c   :  { %1039 = vmatpush3.bf16.msra.mxu0 %v1216_v26 }
  0x1d   :  { %1121 = vmatpush3.bf16.msra.mxu1 %v1217_v27  ;;  %1040 = vmatprep.subr.bf16.mxu0 %v1218_v28 }
  0x1e   :  { %1122 = vmatprep.subr.bf16.mxu1 %v1219_v29 }
  0x20   :  { %1041 = vmatpush3.bf16.msra.mxu0 %v1220_v30 }
  0x21   :  { %1123 = vmatpush3.bf16.msra.mxu1 %v1221_v31 }
  0x23   :  { %567 = vmatmul.mubr.bf16.vlgmr.msra.gmra.mxu0 %v1222_v32 }
  0x24   :  { %687 = vmatmul.mubr.bf16.vlgmr.msra.gmra.mxu1 %v1225_v34  ;;  %574 = vmatprep.mubr.bf16.mxu0 %v1228_v36 }
  0x25   :  { %694 = vmatprep.mubr.bf16.mxu1 %v1230_v37 }
  0x2b   :  { %575 = vmatmul.mubr.bf16.gmra.mxu0 %v1232_v38 }
  0x2c   :  { %695 = vmatmul.mubr.bf16.gmra.mxu1 %v1233_v39  ;;  %582 = vmatprep.mubr.bf16.mxu0 %v1234_v40 }
  0x2d   :  { %702 = vmatprep.mubr.bf16.mxu1 %v1236_v41 }
  0x33   :  { %583 = vmatmul.mubr.bf16.gmra.mxu0 %v1238_v42 }
  0x34   :  { %703 = vmatmul.mubr.bf16.gmra.mxu1 %v1239_v43  ;;  %590 = vmatprep.mubr.bf16.mxu0 %v1240_v44 }
  0x35   :  { %710 = vmatprep.mubr.bf16.mxu1 %v1242_v45 }
  0x3b   :  { %591 = vmatmul.mubr.bf16.gmra.mxu0 %v1244_v46 }
  0x3c   :  { %711 = vmatmul.mubr.bf16.gmra.mxu1 %v1245_v47  ;;  %598 = vmatprep.mubr.bf16.mxu0 %v1246_v48 }
  0x3d   :  { %718 = vmatprep.mubr.bf16.mxu1 %v1248_v49 }
  0x43   :  { %599 = vmatmul.mubr.bf16.gmra.mxu0 %v1250_v50 }
  0x44   :  { %719 = vmatmul.mubr.bf16.gmra.mxu1 %v1251_v51  ;;  %606 = vmatprep.mubr.bf16.mxu0 %v1252_v52 }
  0x45   :  { %726 = vmatprep.mubr.bf16.mxu1 %v1254_v53 }
  0x4b   :  { %607 = vmatmul.mubr.bf16.gmra.mxu0 %v1256_v54 }
  0x4c   :  { %727 = vmatmul.mubr.bf16.gmra.mxu1 %v1257_v55  ;;  %614 = vmatprep.mubr.bf16.mxu0 %v1258_v56 }
  0x4d   :  { %734 = vmatprep.mubr.bf16.mxu1 %v1260_v57 }
  0x53   :  { %615 = vmatmul.mubr.bf16.gmra.mxu0 %v1262_v58 }
  0x54   :  { %735 = vmatmul.mubr.bf16.gmra.mxu1 %v1263_v59  ;;  %622 = vmatprep.mubr.bf16.mxu0 %v1264_v60 }
  0x55   :  { %742 = vmatprep.mubr.bf16.mxu1 %v1266_v61 }
  0x5b   :  { %623 = vmatmul.mubr.bf16.gmra.mxu0 %v1268_v62 }
  0x5c   :  { %743 = vmatmul.mubr.bf16.gmra.mxu1 %v1269_v63  ;;  %630 = vmatprep.mubr.bf16.mxu0 %v1270_v0 }
  0x5d   :  { %750 = vmatprep.mubr.bf16.mxu1 %v1272_v1 }
  0x63   :  { %631 = vmatmul.mubr.bf16.gmra.mxu0 %v1274_v2 }
  0x64   :  { %751 = vmatmul.mubr.bf16.gmra.mxu1 %v1275_v3  ;;  %638 = vmatprep.mubr.bf16.mxu0 %v1276_v4 }
  0x65   :  { %758 = vmatprep.mubr.bf16.mxu1 %v1278_v5 }
  0x6b   :  { %639 = vmatmul.mubr.bf16.gmra.mxu0 %v1280_v8 }
  0x6c   :  { %759 = vmatmul.mubr.bf16.gmra.mxu1 %v1281_v9  ;;  %646 = vmatprep.mubr.bf16.mxu0 %v949_v10 }
  0x6d   :  { %766 = vmatprep.mubr.bf16.mxu1 %v951_v11 }
  0x73   :  { %647 = vmatmul.mubr.bf16.gmra.mxu0 %v948_v12 }
  0x74   :  { %767 = vmatmul.mubr.bf16.gmra.mxu1 %v950_v13 }
  0xe3   :  { %v1042_v14 = vpop.f32.mrf.mxu0 }
  0xe4   :  { %v1124_v15 = vpop.f32.mrf.mxu1 }
  0xe5   :  { %v1043_v17 = vpop.f32.mrf.mxu0 }
  0xe6   :  { %v1044_v18 = vadd.f32 %v1043_v17, %v1042_v14  ;;  %v1125_v19 = vpop.f32.mrf.mxu1 }
  0xe7   :  { %v1045_v20 = vpop.f32.mrf.mxu0  ;;  %v1126_v22 = vadd.f32 %v1125_v19, %v1124_v15 }
  0xe8   :  { %v569_v21 = vadd.f32 %v1044_v18, %v1531_v16  ;;  %v1127_v23 = vpop.f32.mrf.mxu1 }
  0xe9   :  { %v1046_v24 = vpop.f32.mrf.mxu0 }
  0xea   :  { %v689_v25 = vadd.f32 %v1126_v22, %v569_v21  ;;  %v1047_v26 = vadd.f32 %v1046_v24, %v1045_v20  ;;  %v1128_v27 = vpop.f32.mrf.mxu1 }
  0xeb   :  { %v1048_v28 = vpop.f32.mrf.mxu0  ;;  %v1129_v31 = vadd.f32 %v1128_v27, %v1127_v23 }
  0xec   :  { %v774_v29 = vmax.f32 %v689_v25, 0.0  ;;  %v572_v30 = vadd.f32 %v1047_v26, %v1531_v16  ;;  %v1130_v32 = vpop.f32.mrf.mxu1 }
  0xed   :  { %v1049_v33 = vpop.f32.mrf.mxu0 }
  0xee   :  { %v1005_v34 = vpack.c.bf16 %v774_v29, %v774_v29  ;;  %v692_v35 = vadd.f32 %v1129_v31, %v572_v30  ;;  %v1050_v36 = vadd.f32 %v1049_v33, %v1048_v28  ;;  %v1131_v37 = vpop.f32.mrf.mxu1 }
  0xef   :  { %v1051_v38 = vpop.f32.mrf.mxu0  ;;  %v1132_v41 = vadd.f32 %v1131_v37, %v1130_v32 }
  0xf0   :  { %881 = vst.msk [vmem:[%s1640_s3] sm:$0xf] %vm880_vm0, %v1005_v34  ;;  %v775_v39 = vmax.f32 %v692_v35, 0.0  ;;  %v577_v40 = vadd.f32 %v1050_v36, %v1531_v16  ;;  %v1133_v42 = vpop.f32.mrf.mxu1 }
  0xf1   :  { %v1052_v43 = vpop.f32.mrf.mxu0 }
  0xf2   :  { %v1006_v44 = vpack.c.bf16 %v775_v39, %v775_v39  ;;  %v697_v45 = vadd.f32 %v1132_v41, %v577_v40  ;;  %v1053_v46 = vadd.f32 %v1052_v43, %v1051_v38  ;;  %v1134_v47 = vpop.f32.mrf.mxu1 }
  0xf3   :  { %v1054_v48 = vpop.f32.mrf.mxu0  ;;  %v1135_v51 = vadd.f32 %v1134_v47, %v1133_v42 }
  0xf4   :  { %882 = vst.msk [vmem:[%s1640_s3 + $0x4] sm:$0xf] %vm880_vm0, %v1006_v44  ;;  %v776_v49 = vmax.f32 %v697_v45, 0.0  ;;  %v580_v50 = vadd.f32 %v1053_v46, %v1531_v16  ;;  %v1136_v52 = vpop.f32.mrf.mxu1 }
  0xf5   :  { %v1055_v53 = vpop.f32.mrf.mxu0 }
  0xf6   :  { %v1007_v54 = vpack.c.bf16 %v776_v49, %v776_v49  ;;  %v700_v55 = vadd.f32 %v1135_v51, %v580_v50  ;;  %v1056_v56 = vadd.f32 %v1055_v53, %v1054_v48  ;;  %v1137_v57 = vpop.f32.mrf.mxu1 }
  0xf7   :  { %v1057_v58 = vpop.f32.mrf.mxu0  ;;  %v1138_v61 = vadd.f32 %v1137_v57, %v1136_v52 }
  0xf8   :  { %883 = vst.msk [vmem:[%s1640_s3 + $0x8] sm:$0xf] %vm880_vm0, %v1007_v54  ;;  %v777_v59 = vmax.f32 %v700_v55, 0.0  ;;  %v585_v60 = vadd.f32 %v1056_v56, %v1531_v16  ;;  %v1139_v62 = vpop.f32.mrf.mxu1 }
  0xf9   :  { %v1058_v63 = vpop.f32.mrf.mxu0 }
  0xfa   :  { %v1008_v0 = vpack.c.bf16 %v777_v59, %v777_v59  ;;  %v705_v1 = vadd.f32 %v1138_v61, %v585_v60  ;;  %v1059_v2 = vadd.f32 %v1058_v63, %v1057_v58  ;;  %v1140_v3 = vpop.f32.mrf.mxu1 }
  0xfb   :  { %v1060_v4 = vpop.f32.mrf.mxu0  ;;  %v1141_v7 = vadd.f32 %v1140_v3, %v1139_v62 }
  0xfc   :  { %884 = vst.msk [vmem:[%s1640_s3 + $0xc] sm:$0xf] %vm880_vm0, %v1008_v0  ;;  %v778_v5 = vmax.f32 %v705_v1, 0.0  ;;  %v588_v6 = vadd.f32 %v1059_v2, %v1531_v16  ;;  %v1142_v8 = vpop.f32.mrf.mxu1 }
  0xfd   :  { %v1061_v9 = vpop.f32.mrf.mxu0 }
  0xfe   :  { %v1009_v10 = vpack.c.bf16 %v778_v5, %v778_v5  ;;  %v708_v11 = vadd.f32 %v1141_v7, %v588_v6  ;;  %v1062_v12 = vadd.f32 %v1061_v9, %v1060_v4  ;;  %v1143_v13 = vpop.f32.mrf.mxu1 }
  0xff   :  { %v1063_v14 = vpop.f32.mrf.mxu0  ;;  %v1144_v18 = vadd.f32 %v1143_v13, %v1142_v8 }
 0x100   :  { %885 = vst.msk [vmem:[%s1640_s3 + $0x10] sm:$0xf] %vm880_vm0, %v1009_v10  ;;  %v779_v15 = vmax.f32 %v708_v11, 0.0  ;;  %v593_v17 = vadd.f32 %v1062_v12, %v1531_v16  ;;  %v1145_v19 = vpop.f32.mrf.mxu1 }
 0x101   :  { %v1064_v20 = vpop.f32.mrf.mxu0 }
 0x102   :  { %v1010_v21 = vpack.c.bf16 %v779_v15, %v779_v15  ;;  %v713_v22 = vadd.f32 %v1144_v18, %v593_v17  ;;  %v1065_v23 = vadd.f32 %v1064_v20, %v1063_v14  ;;  %v1146_v24 = vpop.f32.mrf.mxu1 }
 0x103   :  { %v1066_v25 = vpop.f32.mrf.mxu0  ;;  %v1147_v28 = vadd.f32 %v1146_v24, %v1145_v19 }
 0x104   :  { %886 = vst.msk [vmem:[%s1640_s3 + $0x14] sm:$0xf] %vm880_vm0, %v1010_v21  ;;  %v780_v26 = vmax.f32 %v713_v22, 0.0  ;;  %v596_v27 = vadd.f32 %v1065_v23, %v1531_v16  ;;  %v1148_v29 = vpop.f32.mrf.mxu1 }
 0x105   :  { %v1067_v30 = vpop.f32.mrf.mxu0 }
 0x106   :  { %v1011_v31 = vpack.c.bf16 %v780_v26, %v780_v26  ;;  %v716_v32 = vadd.f32 %v1147_v28, %v596_v27  ;;  %v1068_v33 = vadd.f32 %v1067_v30, %v1066_v25  ;;  %v1149_v34 = vpop.f32.mrf.mxu1 }
 0x107   :  { %v1069_v35 = vpop.f32.mrf.mxu0  ;;  %v1150_v38 = vadd.f32 %v1149_v34, %v1148_v29 }
 0x108   :  { %887 = vst.msk [vmem:[%s1640_s3 + $0x18] sm:$0xf] %vm880_vm0, %v1011_v31  ;;  %v781_v36 = vmax.f32 %v716_v32, 0.0  ;;  %v601_v37 = vadd.f32 %v1068_v33, %v1531_v16  ;;  %v1151_v39 = vpop.f32.mrf.mxu1 }
 0x109   :  { %v1070_v40 = vpop.f32.mrf.mxu0 }
 0x10a   :  { %v1012_v41 = vpack.c.bf16 %v781_v36, %v781_v36  ;;  %v721_v42 = vadd.f32 %v1150_v38, %v601_v37  ;;  %v1071_v43 = vadd.f32 %v1070_v40, %v1069_v35  ;;  %v1152_v44 = vpop.f32.mrf.mxu1 }
 0x10b   :  { %v1072_v45 = vpop.f32.mrf.mxu0  ;;  %v1153_v48 = vadd.f32 %v1152_v44, %v1151_v39 }
 0x10c   :  { %888 = vst.msk [vmem:[%s1640_s3 + $0x1c] sm:$0xf] %vm880_vm0, %v1012_v41  ;;  %v782_v46 = vmax.f32 %v721_v42, 0.0  ;;  %v604_v47 = vadd.f32 %v1071_v43, %v1531_v16  ;;  %v1154_v49 = vpop.f32.mrf.mxu1 }
 0x10d   :  { %v1073_v50 = vpop.f32.mrf.mxu0 }
 0x10e   :  { %v1013_v51 = vpack.c.bf16 %v782_v46, %v782_v46  ;;  %v724_v52 = vadd.f32 %v1153_v48, %v604_v47  ;;  %v1074_v53 = vadd.f32 %v1073_v50, %v1072_v45  ;;  %v1155_v54 = vpop.f32.mrf.mxu1 }
 0x10f   :  { %v1075_v55 = vpop.f32.mrf.mxu0  ;;  %v1156_v58 = vadd.f32 %v1155_v54, %v1154_v49 }
 0x110   :  { %889 = vst.msk [vmem:[%s1640_s3 + $0x20] sm:$0xf] %vm880_vm0, %v1013_v51  ;;  %v783_v56 = vmax.f32 %v724_v52, 0.0  ;;  %v609_v57 = vadd.f32 %v1074_v53, %v1531_v16  ;;  %v1157_v59 = vpop.f32.mrf.mxu1 }
 0x111   :  { %v1076_v60 = vpop.f32.mrf.mxu0 }
 0x112   :  { %v1014_v61 = vpack.c.bf16 %v783_v56, %v783_v56  ;;  %v729_v62 = vadd.f32 %v1156_v58, %v609_v57  ;;  %v1077_v63 = vadd.f32 %v1076_v60, %v1075_v55  ;;  %v1158_v0 = vpop.f32.mrf.mxu1 }
 0x113   :  { %v1078_v1 = vpop.f32.mrf.mxu0  ;;  %v1159_v4 = vadd.f32 %v1158_v0, %v1157_v59 }
 0x114   :  { %890 = vst.msk [vmem:[%s1640_s3 + $0x24] sm:$0xf] %vm880_vm0, %v1014_v61  ;;  %v784_v2 = vmax.f32 %v729_v62, 0.0  ;;  %v612_v3 = vadd.f32 %v1077_v63, %v1531_v16  ;;  %v1160_v5 = vpop.f32.mrf.mxu1 }
 0x115   :  { %v1079_v6 = vpop.f32.mrf.mxu0 }
 0x116   :  { %v1015_v7 = vpack.c.bf16 %v784_v2, %v784_v2  ;;  %v732_v8 = vadd.f32 %v1159_v4, %v612_v3  ;;  %v1080_v9 = vadd.f32 %v1079_v6, %v1078_v1  ;;  %v1161_v10 = vpop.f32.mrf.mxu1 }
 0x117   :  { %v1081_v11 = vpop.f32.mrf.mxu0  ;;  %v1162_v14 = vadd.f32 %v1161_v10, %v1160_v5 }
 0x118   :  { %891 = vst.msk [vmem:[%s1640_s3 + $0x28] sm:$0xf] %vm880_vm0, %v1015_v7  ;;  %v785_v12 = vmax.f32 %v732_v8, 0.0  ;;  %v617_v13 = vadd.f32 %v1080_v9, %v1531_v16  ;;  %v1163_v15 = vpop.f32.mrf.mxu1 }
 0x119   :  { %v1082_v17 = vpop.f32.mrf.mxu0 }
 0x11a   :  { %v1016_v18 = vpack.c.bf16 %v785_v12, %v785_v12  ;;  %v737_v19 = vadd.f32 %v1162_v14, %v617_v13  ;;  %v1083_v20 = vadd.f32 %v1082_v17, %v1081_v11  ;;  %v1164_v21 = vpop.f32.mrf.mxu1 }
 0x11b   :  { %v1084_v22 = vpop.f32.mrf.mxu0  ;;  %v1165_v25 = vadd.f32 %v1164_v21, %v1163_v15 }
 0x11c   :  { %892 = vst.msk [vmem:[%s1640_s3 + $0x2c] sm:$0xf] %vm880_vm0, %v1016_v18  ;;  %v786_v23 = vmax.f32 %v737_v19, 0.0  ;;  %v620_v24 = vadd.f32 %v1083_v20, %v1531_v16  ;;  %v1166_v26 = vpop.f32.mrf.mxu1 }
 0x11d   :  { %v1085_v27 = vpop.f32.mrf.mxu0 }
 0x11e   :  { %v1017_v28 = vpack.c.bf16 %v786_v23, %v786_v23  ;;  %v740_v29 = vadd.f32 %v1165_v25, %v620_v24  ;;  %v1086_v30 = vadd.f32 %v1085_v27, %v1084_v22  ;;  %v1167_v31 = vpop.f32.mrf.mxu1 }
 0x11f   :  { %v1087_v32 = vpop.f32.mrf.mxu0  ;;  %v1168_v35 = vadd.f32 %v1167_v31, %v1166_v26 }
 0x120   :  { %893 = vst.msk [vmem:[%s1640_s3 + $0x30] sm:$0xf] %vm880_vm0, %v1017_v28  ;;  %v787_v33 = vmax.f32 %v740_v29, 0.0  ;;  %v625_v34 = vadd.f32 %v1086_v30, %v1531_v16  ;;  %v1169_v36 = vpop.f32.mrf.mxu1 }
 0x121   :  { %v1088_v37 = vpop.f32.mrf.mxu0 }
 0x122   :  { %v1018_v38 = vpack.c.bf16 %v787_v33, %v787_v33  ;;  %v745_v39 = vadd.f32 %v1168_v35, %v625_v34  ;;  %v1089_v40 = vadd.f32 %v1088_v37, %v1087_v32  ;;  %v1170_v41 = vpop.f32.mrf.mxu1 }
 0x123   :  { %v1090_v42 = vpop.f32.mrf.mxu0  ;;  %v1171_v45 = vadd.f32 %v1170_v41, %v1169_v36 }
 0x124   :  { %894 = vst.msk [vmem:[%s1640_s3 + $0x34] sm:$0xf] %vm880_vm0, %v1018_v38  ;;  %v788_v43 = vmax.f32 %v745_v39, 0.0  ;;  %v628_v44 = vadd.f32 %v1089_v40, %v1531_v16  ;;  %v1172_v46 = vpop.f32.mrf.mxu1 }
 0x125   :  { %v1091_v47 = vpop.f32.mrf.mxu0 }
 0x126   :  { %v1019_v48 = vpack.c.bf16 %v788_v43, %v788_v43  ;;  %v748_v49 = vadd.f32 %v1171_v45, %v628_v44  ;;  %v1092_v50 = vadd.f32 %v1091_v47, %v1090_v42  ;;  %v1173_v51 = vpop.f32.mrf.mxu1 }
 0x127   :  { %v1093_v52 = vpop.f32.mrf.mxu0  ;;  %v1174_v55 = vadd.f32 %v1173_v51, %v1172_v46 }
 0x128   :  { %895 = vst.msk [vmem:[%s1640_s3 + $0x38] sm:$0xf] %vm880_vm0, %v1019_v48  ;;  %v789_v53 = vmax.f32 %v748_v49, 0.0  ;;  %v633_v54 = vadd.f32 %v1092_v50, %v1531_v16  ;;  %v1175_v56 = vpop.f32.mrf.mxu1 }
 0x129   :  { %v1094_v57 = vpop.f32.mrf.mxu0 }
 0x12a   :  { %v1020_v58 = vpack.c.bf16 %v789_v53, %v789_v53  ;;  %v753_v59 = vadd.f32 %v1174_v55, %v633_v54  ;;  %v1095_v60 = vadd.f32 %v1094_v57, %v1093_v52  ;;  %v1176_v61 = vpop.f32.mrf.mxu1 }
 0x12b   :  { %v1096_v62 = vpop.f32.mrf.mxu0  ;;  %v1177_v1 = vadd.f32 %v1176_v61, %v1175_v56 }
 0x12c   :  { %896 = vst.msk [vmem:[%s1640_s3 + $0x3c] sm:$0xf] %vm880_vm0, %v1020_v58  ;;  %v790_v63 = vmax.f32 %v753_v59, 0.0  ;;  %v636_v0 = vadd.f32 %v1095_v60, %v1531_v16  ;;  %v1178_v2 = vpop.f32.mrf.mxu1 }
 0x12d   :  { %v1097_v3 = vpop.f32.mrf.mxu0 }
 0x12e   :  { %v1021_v4 = vpack.c.bf16 %v790_v63, %v790_v63  ;;  %v756_v5 = vadd.f32 %v1177_v1, %v636_v0  ;;  %v1098_v6 = vadd.f32 %v1097_v3, %v1096_v62  ;;  %v1179_v7 = vpop.f32.mrf.mxu1 }
 0x12f   :  { %v1099_v8 = vpop.f32.mrf.mxu0  ;;  %v1180_v11 = vadd.f32 %v1179_v7, %v1178_v2 }
 0x130   :  { %897 = vst.msk [vmem:[%s1640_s3 + $0x40] sm:$0xf] %vm880_vm0, %v1021_v4  ;;  %v791_v9 = vmax.f32 %v756_v5, 0.0  ;;  %v641_v10 = vadd.f32 %v1098_v6, %v1531_v16  ;;  %v1181_v12 = vpop.f32.mrf.mxu1 }
 0x131   :  { %v1100_v13 = vpop.f32.mrf.mxu0 }
 0x132   :  { %v1022_v14 = vpack.c.bf16 %v791_v9, %v791_v9  ;;  %v761_v15 = vadd.f32 %v1180_v11, %v641_v10  ;;  %v1101_v17 = vadd.f32 %v1100_v13, %v1099_v8  ;;  %v1182_v18 = vpop.f32.mrf.mxu1 }
 0x133   :  { %v1102_v19 = vpop.f32.mrf.mxu0  ;;  %v1183_v22 = vadd.f32 %v1182_v18, %v1181_v12 }
 0x134   :  { %898 = vst.msk [vmem:[%s1640_s3 + $0x44] sm:$0xf] %vm880_vm0, %v1022_v14  ;;  %v792_v20 = vmax.f32 %v761_v15, 0.0  ;;  %v644_v21 = vadd.f32 %v1101_v17, %v1531_v16  ;;  %v1184_v23 = vpop.f32.mrf.mxu1 }
 0x135   :  { %v1103_v24 = vpop.f32.mrf.mxu0 }
 0x136   :  { %v1023_v25 = vpack.c.bf16 %v792_v20, %v792_v20  ;;  %v764_v26 = vadd.f32 %v1183_v22, %v644_v21  ;;  %v1104_v27 = vadd.f32 %v1103_v24, %v1102_v19  ;;  %v1185_v28 = vpop.f32.mrf.mxu1 }
 0x137   :  { %v1105_v29 = vpop.f32.mrf.mxu0  ;;  %v1186_v32 = vadd.f32 %v1185_v28, %v1184_v23 }
 0x138   :  { %899 = vst.msk [vmem:[%s1640_s3 + $0x48] sm:$0xf] %vm880_vm0, %v1023_v25  ;;  %v793_v30 = vmax.f32 %v764_v26, 0.0  ;;  %v649_v31 = vadd.f32 %v1104_v27, %v1531_v16  ;;  %v1187_v33 = vpop.f32.mrf.mxu1 }
 0x139   :  { %v1106_v34 = vpop.f32.mrf.mxu0 }
 0x13a   :  { %v1024_v35 = vpack.c.bf16 %v793_v30, %v793_v30  ;;  %v769_v36 = vadd.f32 %v1186_v32, %v649_v31  ;;  %v1188_v37 = vpop.f32.mrf.mxu1 }
 0x13c   :  { %900 = vst.msk [vmem:[%s1640_s3 + $0x4c] sm:$0xf] %vm880_vm0, %v1024_v35  ;;  %v794_v38 = vmax.f32 %v769_v36, 0.0 }
 0x13e   :  { %v1025_v39 = vpack.c.bf16 %v794_v38, %v794_v38 }
 0x140   :  { %902 = vst.msk [vmem:[%s1640_s3 + $0x50] sm:$0x1] %vm901_vm1, %v1025_v39 }

// kernel: net_forward.6
= control target key start
LH: loop header
LB: loop body
LE: loop exit
PB: predicated region body
PF: predicated region fallthrough
CT: control target
= control target key end

     0   :  { %v1248_v34 = vmov 0.0   ;;  %vm1249_vm0 = vmmov 0   ;;  %vm516_vm1 = vcmask 523264   ;;  %vm868_vm2 = vcmask 519168   ;;  %s1647_s1 = inlined_call_operand.vmem [shape: bf16[576,64], index: 1, kind: input, shape index: {}]   ;;  %s1648_s0 = inlined_call_operand.vmem [shape: bf16[98,576], index: 0, kind: input, shape index: {}]   ;;  %s1649_s2 = inlined_call_operand.vmem [shape: f32[1,64], index: 2, kind: input, shape index: {}]   ;;  %s1650_s3 = inlined_call_operand.vmem [shape: bf16[98,64], index: 3, kind: output, shape index: {}]  }
   0x1   :  { %v1165_v0 = vld [vmem:[%s1647_s1 + $0x78] sm:$0xff]   ;;  %v1169_v4 = vld [vmem:[%s1647_s1 + $0x70] sm:$0xff]   ;;  %v1173_v8 = vld [vmem:[%s1647_s1 + $0x68] sm:$0xff]   ;;  %vm881_vm3 = vcmask 516096  }
   0x2   :  { %v1166_v1 = vld [vmem:[%s1647_s1 + $0xf8] sm:$0xff]   ;;  %992 = vmatprep.subr.bf16.mxu0 %v1165_v0  ;;  %v1170_v5 = vld [vmem:[%s1647_s1 + $0xf0] sm:$0xff]   ;;  %v1174_v9 = vld [vmem:[%s1647_s1 + $0xe8] sm:$0xff]  }
   0x3   :  { %v1167_v2 = vld [vmem:[%s1647_s1 + $0x38] sm:$0xff]   ;;  %1050 = vmatprep.subr.bf16.mxu1 %v1166_v1  ;;  %v1171_v6 = vld [vmem:[%s1647_s1 + $0x30] sm:$0xff]   ;;  %v1175_v10 = vld [vmem:[%s1647_s1 + $0x28] sm:$0xff]  }
   0x4   :  { %v1168_v3 = vld [vmem:[%s1647_s1 + $0xb8] sm:$0xff]   ;;  %993 = vmatpush3.bf16.msra.mxu0 %v1167_v2  ;;  %v1172_v7 = vld [vmem:[%s1647_s1 + $0xb0] sm:$0xff]   ;;  %v1176_v11 = vld [vmem:[%s1647_s1 + $0xa8] sm:$0xff]  }
   0x5   :  { %1051 = vmatpush3.bf16.msra.mxu1 %v1168_v3  ;;  %994 = vmatprep.subr.bf16.mxu0 %v1169_v4  ;;  %v1177_v12 = vld [vmem:[%s1647_s1 + $0x60] sm:$0xff]   ;;  %v1181_v16 = vld [vmem:[%s1647_s1 + $0x58] sm:$0xff]   ;;  %v1185_v20 = vld [vmem:[%s1647_s1 + $0x50] sm:$0xff]  }
   0x6   :  { %1052 = vmatprep.subr.bf16.mxu1 %v1170_v5  ;;  %v1178_v13 = vld [vmem:[%s1647_s1 + $0xe0] sm:$0xff]   ;;  %v1182_v17 = vld [vmem:[%s1647_s1 + $0xd8] sm:$0xff]   ;;  %v1186_v21 = vld [vmem:[%s1647_s1 + $0xd0] sm:$0xff]  }
   0x7   :  { %v1179_v14 = vld [vmem:[%s1647_s1 + $0x20] sm:$0xff]   ;;  %v1183_v18 = vld [vmem:[%s1647_s1 + $0x18] sm:$0xff]   ;;  %v1187_v22 = vld [vmem:[%s1647_s1 + $0x10] sm:$0xff]  }
   0x8   :  { %995 = vmatpush3.bf16.msra.mxu0 %v1171_v6  ;;  %v1180_v15 = vld [vmem:[%s1647_s1 + $0xa0] sm:$0xff]   ;;  %v1184_v19 = vld [vmem:[%s1647_s1 + $0x98] sm:$0xff]   ;;  %v1188_v23 = vld [vmem:[%s1647_s1 + $0x90] sm:$0xff]  }
   0x9   :  { %1053 = vmatpush3.bf16.msra.mxu1 %v1172_v7  ;;  %996 = vmatprep.subr.bf16.mxu0 %v1173_v8  ;;  %v1189_v24 = vld [vmem:[%s1647_s1 + $0x48] sm:$0xff]   ;;  %v1193_v28 = vld [vmem:[%s1647_s1 + $0x40] sm:$0xff]   ;;  %v1203_v37 = vld [vmem:[%s1647_s1 + $0x118] sm:$0xff]  }
   0xa   :  { %1054 = vmatprep.subr.bf16.mxu1 %v1174_v9  ;;  %v1190_v25 = vld [vmem:[%s1647_s1 + $0xc8] sm:$0xff]   ;;  %v1194_v29 = vld [vmem:[%s1647_s1 + $0xc0] sm:$0xff]   ;;  %v1214_v43 = vld [vmem:[%s1647_s1 + $0x110] sm:$0xff]  }
   0xb   :  { %v1191_v26 = vld [vmem:[%s1647_s1 + $0x8] sm:$0xff]   ;;  %v1195_v30 = vld [vmem:[%s1647_s1] sm:$0xff]   ;;  %v1212_v44 = vld [vmem:[%s1648_s0 + $0x5c] ss:$20 sps:$4 sm:$0xff]  }
   0xc   :  { %997 = vmatpush3.bf16.msra.mxu0 %v1175_v10  ;;  %v1192_v27 = vld [vmem:[%s1647_s1 + $0x88] sm:$0xff]   ;;  %v1196_v31 = vld [vmem:[%s1647_s1 + $0x80] sm:$0xff]   ;;  %v1217_v48 = vld [vmem:[%s1648_s0 + $0x7c] ss:$20 sps:$4 sm:$0xff]  }
   0xd   :  { %1055 = vmatpush3.bf16.msra.mxu1 %v1176_v11  ;;  %998 = vmatprep.subr.bf16.mxu0 %v1177_v12  ;;  %v1197_v32 = vld [vmem:[%s1648_s0] ss:$20 sps:$4 sm:$0xff]   ;;  %v1199_v33 = vld [vmem:[%s1648_s0 + $0x4] ss:$20 sps:$4 sm:$0xff]   ;;  %v1200_v35 = vld [vmem:[%s1648_s0 + $0x8] ss:$20 sps:$4 sm:$0xff]  }
   0xe   :  { %1056 = vmatprep.subr.bf16.mxu1 %v1178_v13  ;;  %v1202_v36 = vld [vmem:[%s1648_s0 + $0xc] ss:$20 sps:$4 sm:$0xff]   ;;  %570 = vmatprep.mubr.bf16.mxu0 %v1199_v33  ;;  %v1206_v39 = vld [vmem:[%s1648_s0 + $0x34] ss:$20 sps:$4 sm:$0xff]   ;;  %v1209_v41 = vld [vmem:[%s1648_s0 + $0x30] ss:$20 sps:$4 sm:$0xff]  }
   0xf   :  { %658 = vmatprep.mubr.bf16.mxu1 %v1202_v36  ;;  %v1204_v38 = vld [vmem:[%s1648_s0 + $0x2c] ss:$20 sps:$4 sm:$0xff]   ;;  %v1208_v40 = vld [vmem:[%s1648_s0 + $0x28] ss:$20 sps:$4 sm:$0xff]   ;;  %v1215_v46 = vld [vmem:[%s1648_s0 + $0x50] ss:$20 sps:$4 sm:$0xff]  }
  0x10   :  { %999 = vmatpush3.bf16.msra.mxu0 %v1179_v14  ;;  %v1210_v42 = vld [vmem:[%s1648_s0 + $0x54] ss:$20 sps:$4 sm:$0xff]   ;;  %v1216_v47 = vld [vmem:[%s1648_s0 + $0x58] ss:$20 sps:$4 sm:$0xff]   ;;  %v1236_v50 = vld [vmem:[%s1647_s1 + $0x100] sm:$0xff]  }
  0x11   :  { %1057 = vmatpush3.bf16.msra.mxu1 %v1180_v15  ;;  %1000 = vmatprep.subr.bf16.mxu0 %v1181_v16  ;;  %v1223_v45 = vld [vmem:[%s1647_s1 + $0x108] sm:$0xff]   ;;  %v1219_v49 = vld [vmem:[%s1648_s0 + $0x84] ss:$20 sps:$4 sm:$0xff]   ;;  %v1222_v52 = vld [vmem:[%s1648_s0 + $0x80] ss:$20 sps:$4 sm:$0xff]  }
  0x12   :  { %1058 = vmatprep.subr.bf16.mxu1 %v1182_v17  ;;  %v1221_v51 = vld [vmem:[%s1648_s0 + $0x78] ss:$20 sps:$4 sm:$0xff]   ;;  %v1228_v55 = vld [vmem:[%s1648_s0 + $0xa0] ss:$20 sps:$4 sm:$0xff]   ;;  %v1229_v56 = vld [vmem:[%s1648_s0 + $0xa8] ss:$20 sps:$4 sm:$0xff]  }
  0x13   :  { %v1224_v53 = vld [vmem:[%s1648_s0 + $0xa4] ss:$20 sps:$4 sm:$0xff]   ;;  %v1226_v54 = vld [vmem:[%s1648_s0 + $0xac] ss:$20 sps:$4 sm:$0xff]   ;;  %v1232_v58 = vld [vmem:[%s1648_s0 + $0xd4] ss:$20 sps:$4 sm:$0xff]  }
  0x14   :  { %1001 = vmatpush3.bf16.msra.mxu0 %v1183_v18  ;;  %v1230_v57 = vld [vmem:[%s1648_s0 + $0xcc] ss:$20 sps:$4 sm:$0xff]   ;;  %v51_v59 = vld [vmem:[%s1648_s0 + $0xf0] sm:$0x11]  ;;  %v52_v60 = vld [vmem:[%s1648_s0 + $0xf8] sm:$0x11] }
  0x15   :  { %1059 = vmatpush3.bf16.msra.mxu1 %v1184_v19  ;;  %1002 = vmatprep.subr.bf16.mxu0 %v1185_v20  ;;  %v1234_v61 = vld [vmem:[%s1648_s0 + $0xc8] ss:$20 sps:$4 sm:$0xff]   ;;  %v1235_v62 = vld [vmem:[%s1648_s0 + $0xd0] ss:$20 sps:$4 sm:$0xff]   ;;  %v919_v63 = vcombine.high %v51_v59, %v51_v59  ;;  %v921_v0 = vcombine.high %v52_v60, %v52_v60  ;;  %v918_v1 = vcombine.low %v51_v59, %v51_v59  ;;  %v1243_v5 = vld [vmem:[%s1648_s0 + $0x38] ss:$20 sps:$4 sm:$0xff]  }
  0x16   :  { %1060 = vmatprep.subr.bf16.mxu1 %v1186_v21  ;;  %v920_v2 = vcombine.low %v52_v60, %v52_v60  ;;  %v1241_v3 = vld [vmem:[%s1648_s0 + $0x10] ss:$20 sps:$4 sm:$0xff]   ;;  %v1244_v6 = vld [vmem:[%s1648_s0 + $0xd8] ss:$20 sps:$4 sm:$0xff]   ;;  %v1245_v7 = vld [vmem:[%s1648_s0 + $0x60] ss:$20 sps:$4 sm:$0xff]  }
  0x17   :  { %v1242_v4 = vld [vmem:[%s1648_s0 + $0xb0] ss:$20 sps:$4 sm:$0xff]   ;;  %v1246_v8 = vld [vmem:[%s1648_s0 + $0x100] ss:$0 sps:$4 sm:$0x11]  }
  0x18   :  { %1003 = vmatpush3.bf16.msra.mxu0 %v1187_v22  ;;  %v1247_v9 = vld [vmem:[%s1648_s0 + $0x88] ss:$20 sps:$4 sm:$0xff]   ;;  %v1553_v59 = vld [vmem:[%s1649_s2] ss:$0 sm:$0xff] }
  0x19   :  { %1061 = vmatpush3.bf16.msra.mxu1 %v1188_v23  ;;  %1004 = vmatprep.subr.bf16.mxu0 %v1189_v24 }
  0x1a   :  { %1062 = vmatprep.subr.bf16.mxu1 %v1190_v25 }
  0x1c   :  { %1005 = vmatpush3.bf16.msra.mxu0 %v1191_v26 }
  0x1d   :  { %1063 = vmatpush3.bf16.msra.mxu1 %v1192_v27  ;;  %1006 = vmatprep.subr.bf16.mxu0 %v1193_v28 }
  0x1e   :  { %1064 = vmatprep.subr.bf16.mxu1 %v1194_v29 }
  0x20   :  { %1007 = vmatpush3.bf16.msra.mxu0 %v1195_v30 }
  0x21   :  { %1065 = vmatpush3.bf16.msra.mxu1 %v1196_v31  ;;  %1119 = vmatprep.subr.bf16.mxu0 %v1248_v34 }
  0x22   :  { %1155 = vmatprep.subr.bf16.mxu1 %v1248_v34 }
  0x23   :  { %571 = vmatmul.mubr.bf16.vlgmr.msra.gmra.mxu0 %v1197_v32 }
  0x24   :  { %659 = vmatmul.mubr.bf16.vlgmr.msra.gmra.mxu1 %v1200_v35  ;;  %1120 = vmatpush3.bf16.msra.mxu0 %v1203_v37 }
  0x25   :  { %578 = vmatprep.mubr.bf16.mxu0 %v1204_v38  ;;  %1159 = vmatpush3.bf16.msra.mxu1 %v1203_v37 }
  0x26   :  { %666 = vmatprep.mubr.bf16.mxu1 %v1206_v39  ;;  %1121 = vmatprep.subr.bf16.mxu0 %v1248_v34 }
  0x27   :  { %1156 = vmatprep.subr.bf16.mxu1 %v1248_v34 }
  0x28   :  { %1122 = vmatpush3.bf16.msra.mxu0 %v1214_v43 }
  0x29   :  { %1160 = vmatpush3.bf16.msra.mxu1 %v1214_v43  ;;  %1123 = vmatprep.subr.bf16.mxu0 %v1248_v34 }
  0x2a   :  { %1157 = vmatprep.subr.bf16.mxu1 %v1248_v34 }
  0x2b   :  { %579 = vmatmul.mubr.bf16.gmra.mxu0 %v1208_v40 }
  0x2c   :  { %667 = vmatmul.mubr.bf16.gmra.mxu1 %v1209_v41  ;;  %586 = vmatprep.mubr.bf16.mxu0 %v1210_v42 }
  0x2d   :  { %674 = vmatprep.mubr.bf16.mxu1 %v1212_v44  ;;  %1124 = vmatpush3.bf16.msra.mxu0 %v1223_v45 }
  0x2e   :  { %1161 = vmatpush3.bf16.msra.mxu1 %v1223_v45  ;;  %1125 = vmatprep.subr.bf16.mxu0 %v1248_v34 }
  0x2f   :  { %1158 = vmatprep.subr.bf16.mxu1 %v1248_v34 }
  0x31   :  { %1126 = vmatpush3.bf16.msra.mxu0 %v1236_v50 }
  0x32   :  { %1162 = vmatpush3.bf16.msra.mxu1 %v1236_v50 }
  0x33   :  { %587 = vmatmul.mubr.bf16.gmra.mxu0 %v1215_v46 }
  0x34   :  { %675 = vmatmul.mubr.bf16.gmra.mxu1 %v1216_v47  ;;  %594 = vmatprep.mubr.bf16.mxu0 %v1217_v48 }
  0x35   :  { %682 = vmatprep.mubr.bf16.mxu1 %v1219_v49 }
  0x3b   :  { %595 = vmatmul.mubr.bf16.gmra.mxu0 %v1221_v51 }
  0x3c   :  { %683 = vmatmul.mubr.bf16.gmra.mxu1 %v1222_v52  ;;  %602 = vmatprep.mubr.bf16.mxu0 %v1224_v53 }
  0x3d   :  { %690 = vmatprep.mubr.bf16.mxu1 %v1226_v54 }
  0x43   :  { %603 = vmatmul.mubr.bf16.gmra.mxu0 %v1228_v55 }
  0x44   :  { %691 = vmatmul.mubr.bf16.gmra.mxu1 %v1229_v56  ;;  %610 = vmatprep.mubr.bf16.mxu0 %v1230_v57 }
  0x45   :  { %698 = vmatprep.mubr.bf16.mxu1 %v1232_v58 }
  0x4b   :  { %611 = vmatmul.mubr.bf16.gmra.mxu0 %v1234_v61 }
  0x4c   :  { %699 = vmatmul.mubr.bf16.gmra.mxu1 %v1235_v62  ;;  %618 = vmatprep.mubr.bf16.mxu0 %v919_v63 }
  0x4d   :  { %706 = vmatprep.mubr.bf16.mxu1 %v921_v0 }
  0x53   :  { %619 = vmatmul.mubr.bf16.gmra.mxu0 %v918_v1 }
  0x54   :  { %707 = vmatmul.mubr.bf16.gmra.mxu1 %v920_v2  ;;  %1127 = vmatprep.mubr.msk.bf16.mxu0 %vm1249_vm0, %v1248_v34 }
  0x55   :  { %1143 = vmatprep.mubr.msk.bf16.mxu1 %vm1249_vm0, %v1248_v34 }
  0x5b   :  { %1128 = vmatmul.mubr.msk.bf16.vlgmr.msra.gmra.mxu0 %vm516_vm1, %v1241_v3 }
  0x5c   :  { %1144 = vmatmul.mubr.msk.bf16.vlgmr.msra.gmra.mxu1 %vm516_vm1, %v1242_v4  ;;  %1131 = vmatprep.mubr.msk.bf16.mxu0 %vm1249_vm0, %v1248_v34 }
  0x5d   :  { %1147 = vmatprep.mubr.msk.bf16.mxu1 %vm1249_vm0, %v1248_v34 }
  0x63   :  { %1132 = vmatmul.mubr.msk.bf16.gmra.mxu0 %vm516_vm1, %v1243_v5 }
  0x64   :  { %1148 = vmatmul.mubr.msk.bf16.gmra.mxu1 %vm516_vm1, %v1244_v6  ;;  %1135 = vmatprep.mubr.msk.bf16.mxu0 %vm1249_vm0, %v1248_v34 }
  0x65   :  { %1151 = vmatprep.mubr.msk.bf16.mxu1 %vm1249_vm0, %v1248_v34 }
  0x6b   :  { %1136 = vmatmul.mubr.msk.bf16.gmra.mxu0 %vm516_vm1, %v1245_v7 }
  0x6c   :  { %1152 = vmatmul.mubr.msk.bf16.gmra.mxu1 %vm516_vm1, %v1246_v8  ;;  %1139 = vmatprep.mubr.msk.bf16.mxu0 %vm1249_vm0, %v1248_v34 }
  0x73   :  { %1140 = vmatmul.mubr.msk.bf16.gmra.mxu0 %vm516_vm1, %v1247_v9 }
  0xe3   :  { %v1008_v10 = vpop.f32.mrf.mxu0 }
  0xe4   :  { %v1066_v11 = vpop.f32.mrf.mxu1 }
  0xe5   :  { %v1009_v12 = vpop.f32.mrf.mxu0 }
  0xe6   :  { %v1067_v13 = vpop.f32.mrf.mxu1  ;;  %v1010_v57 = vadd.f32 %v1009_v12, %v1008_v10 }
  0xe7   :  { %v1011_v14 = vpop.f32.mrf.mxu0  ;;  %v1068_v2 = vadd.f32 %v1067_v13, %v1066_v11 }
  0xe8   :  { %v1069_v15 = vpop.f32.mrf.mxu1  ;;  %v573_v1 = vadd.f32 %v1010_v57, %v1553_v59 }
  0xe9   :  { %v1012_v16 = vpop.f32.mrf.mxu0 }
  0xea   :  { %v1070_v17 = vpop.f32.mrf.mxu1  ;;  %v1013_v63 = vadd.f32 %v1012_v16, %v1011_v14  ;;  %v661_v14 = vadd.f32 %v1068_v2, %v573_v1 }
  0xeb   :  { %v1014_v18 = vpop.f32.mrf.mxu0  ;;  %v1071_v10 = vadd.f32 %v1070_v17, %v1069_v15 }
  0xec   :  { %v1506_v19 = vpop.f32.mrf.mxu1  ;;  %v576_v9 = vadd.f32 %v1013_v63, %v1553_v59 }
  0xed   :  { %v1015_v20 = vpop.f32.mrf.mxu0 }
  0xee   :  { %v1508_v21 = vpop.f32.mrf.mxu1  ;;  %v1016_v12 = vadd.f32 %v1015_v20, %v1014_v18  ;;  %v664_v15 = vadd.f32 %v1071_v10, %v576_v9 }
  0xef   :  { %v1510_v22 = vpop.f32.mrf.mxu0 }
  0xf0   :  { %v1512_v23 = vpop.f32.mrf.mxu1 }
  0xf1   :  { %v1514_v24 = vpop.f32.mrf.mxu0 }
  0xf2   :  { %v1516_v25 = vpop.f32.mrf.mxu1  ;;  %v1019_v17 = vadd.f32 %v1514_v24, %v1510_v22 }
  0xf3   :  { %v1518_v26 = vpop.f32.mrf.mxu0 }
  0xf4   :  { %v1520_v27 = vpop.f32.mrf.mxu1  ;;  %v584_v24 = vadd.f32 %v1019_v17, %v1553_v59 }
  0xf5   :  { %v1522_v28 = vpop.f32.mrf.mxu0 }
  0xf6   :  { %v1524_v29 = vpop.f32.mrf.mxu1 }
  0xf7   :  { %v1526_v30 = vpop.f32.mrf.mxu0 }
  0xf8   :  { %v1528_v31 = vpop.f32.mrf.mxu1 }
  0xf9   :  { %v1530_v32 = vpop.f32.mrf.mxu0 }
  0xfa   :  { %v1532_v33 = vpop.f32.mrf.mxu1 }
  0xfb   :  { %v1534_v34 = vpop.f32.mrf.mxu0 }
  0xfc   :  { %v1536_v35 = vpop.f32.mrf.mxu1 }
  0xfd   :  { %v1538_v36 = vpop.f32.mrf.mxu0 }
  0xfe   :  { %v1540_v37 = vpop.f32.mrf.mxu1 }
  0xff   :  { %v1542_v38 = vpop.f32.mrf.mxu0 }
 0x100   :  { %v1544_v39 = vpop.f32.mrf.mxu1 }
 0x101   :  { %1651 = vst [vmem:[#allocation2_spill] sm:$0xff] %v1544_v39  ;;  %v1546_v40 = vpop.f32.mrf.mxu0 }
 0x102   :  { %1652 = vst [vmem:[#allocation3_spill] sm:$0xff] %v1546_v40  ;;  %v1548_v41 = vpop.f32.mrf.mxu1 }
 0x103   :  { %1653 = vst [vmem:[#allocation4_spill] sm:$0xff] %v1548_v41  ;;  %v1032_v42 = vpop.f32.mrf.mxu0 }
 0x104   :  { %v1090_v43 = vpop.f32.mrf.mxu1 }
 0x105   :  { %v1033_v44 = vpop.f32.mrf.mxu0 }
 0x106   :  { %v1091_v45 = vpop.f32.mrf.mxu1  ;;  %v1034_v60 = vadd.f32 %v1033_v44, %v1032_v42 }
 0x107   :  { %v1035_v46 = vpop.f32.mrf.mxu0  ;;  %v1092_v5 = vadd.f32 %v1091_v45, %v1090_v43  ;;  %v581_v43 = vadd.f32 %v1016_v12, %v1553_v59  ;;  %v1074_v45 = vadd.f32 %v1508_v21, %v1506_v19  ;;  %v1077_v19 = vadd.f32 %v1516_v25, %v1512_v23 }
 0x108   :  { %v1093_v47 = vpop.f32.mrf.mxu1  ;;  %v605_v4 = vadd.f32 %v1034_v60, %v1553_v59 }
 0x109   :  { %v1036_v48 = vpop.f32.mrf.mxu0  ;;  %v669_v22 = vadd.f32 %v1074_v45, %v581_v43 }
 0x10a   :  { %v1094_v49 = vpop.f32.mrf.mxu1  ;;  %v1037_v6 = vadd.f32 %v1036_v48, %v1035_v46  ;;  %v693_v13 = vadd.f32 %v1092_v5, %v605_v4 }
 0x10b   :  { %v1038_v50 = vpop.f32.mrf.mxu0  ;;  %v1095_v57 = vadd.f32 %v1094_v49, %v1093_v47 }
 0x10c   :  { %v1096_v51 = vpop.f32.mrf.mxu1  ;;  %v608_v16 = vadd.f32 %v1037_v6, %v1553_v59 }
 0x10d   :  { %v1039_v52 = vpop.f32.mrf.mxu0 }
 0x10e   :  { %v1097_v53 = vpop.f32.mrf.mxu1  ;;  %v1040_v44 = vadd.f32 %v1039_v52, %v1038_v50  ;;  %v696_v60 = vadd.f32 %v1095_v57, %v608_v16 }
 0x10f   :  { %v1041_v54 = vpop.f32.mrf.mxu0  ;;  %v1098_v20 = vadd.f32 %v1097_v53, %v1096_v51 }
 0x110   :  { %v1099_v55 = vpop.f32.mrf.mxu1  ;;  %v613_v18 = vadd.f32 %v1040_v44, %v1553_v59 }
 0x111   :  { %v1042_v56 = vpop.f32.mrf.mxu0 }
 0x112   :  { %v1100_v58 = vpop.f32.mrf.mxu1  ;;  %v1043_v49 = vadd.f32 %v1042_v56, %v1041_v54  ;;  %v701_v54 = vadd.f32 %v1098_v20, %v613_v18 }
 0x113   :  { %v1044_v61 = vpop.f32.mrf.mxu0  ;;  %v1101_v23 = vadd.f32 %v1100_v58, %v1099_v55  ;;  %v1080_v55 = vadd.f32 %v1524_v29, %v1520_v27 }
 0x114   :  { %v1555_v62 = vpop.f32.mrf.mxu1  ;;  %v616_v56 = vadd.f32 %v1043_v49, %v1553_v59 }
 0x115   :  { %v1045_v0 = vpop.f32.mrf.mxu0 }
 0x116   :  { %v1558_v3 = vpop.f32.mrf.mxu1  ;;  %v1046_v25 = vadd.f32 %v1045_v0, %v1044_v61  ;;  %v672_v0 = vadd.f32 %v1077_v19, %v584_v24  ;;  %v704_v29 = vadd.f32 %v1101_v23, %v616_v56  ;;  %v1655_v24 = vld [vmem:[#allocation2_spill] sm:$0xff] }
 0x117   :  { %v1047_v7 = vpop.f32.mrf.mxu0 }
 0x118   :  { %v1105_v8 = vpop.f32.mrf.mxu1  ;;  %v621_v44 = vadd.f32 %v1046_v25, %v1553_v59 }
 0x119   :  { %v1048_v42 = vpop.f32.mrf.mxu0  ;;  %v1025_v8 = vadd.f32 %v1530_v32, %v1526_v30  ;;  %v1104_v30 = vadd.f32 %v1558_v3, %v1555_v62  ;;  %v1028_v62 = vadd.f32 %v1538_v36, %v1534_v34 }
 0x11a   :  { %v1106_v41 = vpop.f32.mrf.mxu1 }
 0x11b   :  { %v748_v11 = vpop.f32.mrf.mxu0  ;;  %v709_v17 = vadd.f32 %v1104_v30, %v621_v44 }
 0x11c   :  { %v749_v39 = vadd.f32 %v748_v11, %v661_v14  ;;  %v780_v40 = vpop.f32.mrf.mxu1  ;;  %v592_v11 = vadd.f32 %v1025_v8, %v1553_v59 }
 0x11d   :  { %v781_v46 = vadd.f32 %v780_v40, %v693_v13  ;;  %v1129_v48 = vpop.f32.mrf.mxu0  ;;  %v1083_v13 = vadd.f32 %v1532_v33, %v1528_v31 }
 0x11e   :  { %v802_v41 = vmax.f32 %v749_v39, 0.0  ;;  %v1145_v47 = vpop.f32.mrf.mxu1  ;;  %v1022_v39 = vadd.f32 %v1522_v28, %v1518_v26 }
 0x11f   :  { %v810_v50 = vmax.f32 %v781_v46, 0.0  ;;  %v751_v52 = vpop.f32.mrf.mxu0  ;;  %v680_v49 = vadd.f32 %v1083_v13, %v592_v11 }
 0x120   :  { %v979_v63 = vpack.c.bf16 %v802_v41, %v802_v41  ;;  %v752_v1 = vadd.f32 %v751_v52, %v664_v15  ;;  %v783_v2 = vpop.f32.mrf.mxu1  ;;  %v589_v42 = vadd.f32 %v1022_v39, %v1553_v59  ;;  %v1086_v52 = vadd.f32 %v1540_v37, %v1536_v35  ;;  %v1656_v39 = vld [vmem:[#allocation4_spill] sm:$0xff] }
 0x121   :  { %v987_v21 = vpack.c.bf16 %v810_v50, %v810_v50  ;;  %v784_v40 = vadd.f32 %v783_v2, %v696_v60  ;;  %v1130_v4 = vpop.f32.mrf.mxu0  ;;  %v597_v50 = vadd.f32 %v1028_v62, %v1553_v59  ;;  %v1654_v60 = vld [vmem:[#allocation3_spill] sm:$0xff] }
 0x122   :  { %869 = vst.msk [vmem:[%s1650_s3] sm:$0xf] %vm868_vm2, %v979_v63  ;;  %v803_v51 = vmax.f32 %v752_v1, 0.0  ;;  %v1146_v53 = vpop.f32.mrf.mxu1  ;;  %v677_v15 = vadd.f32 %v1080_v55, %v589_v42  ;;  %v1031_v63 = vadd.f32 %v1654_v60, %v1542_v38 }
 0x123   :  { %877 = vst.msk [vmem:[%s1650_s3 + $0x20] sm:$0xf] %vm868_vm2, %v987_v21  ;;  %v811_v5 = vmax.f32 %v784_v40, 0.0  ;;  %v756_v6 = vpop.f32.mrf.mxu0 }
 0x124   :  { %v980_v26 = vpack.c.bf16 %v803_v51, %v803_v51  ;;  %v757_v28 = vadd.f32 %v756_v6, %v669_v22  ;;  %v788_v7 = vpop.f32.mrf.mxu1  ;;  %v600_v22 = vadd.f32 %v1031_v63, %v1553_v59  ;;  %v1089_v51 = vadd.f32 %v1656_v39, %v1655_v24 }
 0x125   :  { %v988_v9 = vpack.c.bf16 %v811_v5, %v811_v5  ;;  %v789_v10 = vadd.f32 %v788_v7, %v701_v54  ;;  %v1133_v12 = vpop.f32.mrf.mxu0  ;;  %v685_v54 = vadd.f32 %v1086_v52, %v597_v50 }
 0x126   :  { %870 = vst.msk [vmem:[%s1650_s3 + $0x4] sm:$0xf] %vm868_vm2, %v980_v26  ;;  %v804_v58 = vmax.f32 %v757_v28, 0.0  ;;  %v1149_v61 = vpop.f32.mrf.mxu1  ;;  %v688_v26 = vadd.f32 %v1089_v51, %v600_v22 }
 0x127   :  { %878 = vst.msk [vmem:[%s1650_s3 + $0x24] sm:$0xf] %vm868_vm2, %v988_v9  ;;  %v812_v32 = vmax.f32 %v789_v10, 0.0  ;;  %v759_v27 = vpop.f32.mrf.mxu0 }
 0x128   :  { %v981_v14 = vpack.c.bf16 %v804_v58, %v804_v58  ;;  %v760_v16 = vadd.f32 %v759_v27, %v672_v0  ;;  %v791_v57 = vpop.f32.mrf.mxu1 }
 0x129   :  { %v989_v43 = vpack.c.bf16 %v812_v32, %v812_v32  ;;  %v792_v45 = vadd.f32 %v791_v57, %v704_v29  ;;  %v1134_v46 = vpop.f32.mrf.mxu0 }
 0x12a   :  { %871 = vst.msk [vmem:[%s1650_s3 + $0x8] sm:$0xf] %vm868_vm2, %v981_v14  ;;  %v805_v3 = vmax.f32 %v760_v16, 0.0  ;;  %v1150_v48 = vpop.f32.mrf.mxu1 }
 0x12b   :  { %879 = vst.msk [vmem:[%s1650_s3 + $0x28] sm:$0xf] %vm868_vm2, %v989_v43  ;;  %v813_v31 = vmax.f32 %v792_v45, 0.0  ;;  %v764_v33 = vpop.f32.mrf.mxu0 }
 0x12c   :  { %v982_v18 = vpack.c.bf16 %v805_v3, %v805_v3  ;;  %v765_v20 = vadd.f32 %v764_v33, %v677_v15  ;;  %v796_v41 = vpop.f32.mrf.mxu1 }
 0x12d   :  { %v990_v34 = vpack.c.bf16 %v813_v31, %v813_v31  ;;  %v797_v36 = vadd.f32 %v796_v41, %v709_v17  ;;  %v1137_v47 = vpop.f32.mrf.mxu0 }
 0x12e   :  { %872 = vst.msk [vmem:[%s1650_s3 + $0xc] sm:$0xf] %vm868_vm2, %v982_v18  ;;  %v806_v1 = vmax.f32 %v765_v20, 0.0  ;;  %v1153_v2 = vpop.f32.mrf.mxu1 }
 0x12f   :  { %880 = vst.msk [vmem:[%s1650_s3 + $0x2c] sm:$0xf] %vm868_vm2, %v990_v34  ;;  %v814_v19 = vmax.f32 %v797_v36, 0.0  ;;  %v767_v21 = vpop.f32.mrf.mxu0 }
 0x130   :  { %v983_v40 = vpack.c.bf16 %v806_v1, %v806_v1  ;;  %v768_v35 = vadd.f32 %v767_v21, %v680_v49  ;;  %v799_v37 = vpop.f32.mrf.mxu1 }
 0x131   :  { %v991_v4 = vpack.c.bf16 %v814_v19, %v814_v19  ;;  %v1138_v38 = vpop.f32.mrf.mxu0 }
 0x132   :  { %873 = vst.msk [vmem:[%s1650_s3 + $0x10] sm:$0xf] %vm868_vm2, %v983_v40  ;;  %v807_v53 = vmax.f32 %v768_v35, 0.0  ;;  %v1154_v56 = vpop.f32.mrf.mxu1 }
 0x133   :  { %882 = vst.msk [vmem:[%s1650_s3 + $0x30] sm:$0x1] %vm881_vm3, %v991_v4  ;;  %v772_v23 = vpop.f32.mrf.mxu0 }
 0x134   :  { %v984_v25 = vpack.c.bf16 %v807_v53, %v807_v53  ;;  %v773_v5 = vadd.f32 %v772_v23, %v685_v54 }
 0x135   :  { %v1141_v6 = vpop.f32.mrf.mxu0 }
 0x136   :  { %874 = vst.msk [vmem:[%s1650_s3 + $0x14] sm:$0xf] %vm868_vm2, %v984_v25  ;;  %v808_v59 = vmax.f32 %v773_v5, 0.0 }
 0x137   :  { %v775_v28 = vpop.f32.mrf.mxu0 }
 0x138   :  { %v985_v7 = vpack.c.bf16 %v808_v59, %v808_v59  ;;  %v776_v8 = vadd.f32 %v775_v28, %v688_v26 }
 0x139   :  { %v1142_v9 = vpop.f32.mrf.mxu0 }
 0x13a   :  { %875 = vst.msk [vmem:[%s1650_s3 + $0x18] sm:$0xf] %vm868_vm2, %v985_v7  ;;  %v809_v10 = vmax.f32 %v776_v8, 0.0 }
 0x13c   :  { %v986_v12 = vpack.c.bf16 %v809_v10, %v809_v10 }
 0x13e   :  { %876 = vst.msk [vmem:[%s1650_s3 + $0x1c] sm:$0xf] %vm868_vm2, %v986_v12 }

// kernel: net_forward.7
= control target key start
LH: loop header
LB: loop body
LE: loop exit
PB: predicated region body
PF: predicated region fallthrough
CT: control target
= control target key end

     0   :  { %10 = vsyncpa [#allocation4], 0  ;;  %s2600_s18 = smov 0   ;;  %s2955_s0 = inlined_call_operand.vmem [shape: bf16[2,3200], index: 0, kind: input, shape index: {}]   ;;  %s2956_s1 = inlined_call_operand.vmem [shape: bf16[3200,512], index: 1, kind: input, shape index: {}]   ;;  %s2957_s2 = inlined_call_operand.vmem [shape: f32[1,512], index: 2, kind: input, shape index: {}]   ;;  %s2958_s3 = inlined_call_operand.vmem [shape: bf16[512,6], index: 3, kind: input, shape index: {}]   ;;  %s2959_s4 = inlined_call_operand.vmem [shape: f32[1,6], index: 4, kind: input, shape index: {}]   ;;  %s2960_s5 = inlined_call_operand.hbm [shape: f32[2,6], index: 5, kind: output, shape index: {}]  }
   0x1 LB: > { %s2606_s19 = sadd.s32 4294967295, %s2563_s18   ;;  %p1990_p0 = scmp.ge.s32.totalorder %s2563_s18, 1  ;;  %s2563_s18 = sphi %s2600_s18, %s16_s18  }
   0x2   : > { %p195_p1 = scmp.lt.s32.totalorder %s2563_s18, 6 }
   0x4   : > { %p196_p2 = pnand %p1990_p0, %p195_p1 }
   0x5   : > { %s223_s20 = smul.u32 (!%p196_p2), 5, %s2606_s19  ;;  %p1993_p5 = scmp.ne.s32.totalorder (!%p196_p2), %s2606_s19, 0 }
   0x6   : > { %199 = sbr.rel (%p196_p2) target bundleno = 640 (0x280), region = 40 }
   0x7   : > { %s228_s21 = smul.u32 (!%p196_p2), 80, %s2606_s19  ;;  %p224_p3 = scmp.lt.s32.totalorder (!%p196_p2), %s223_s20, 24 }
   0x9   : > { %p229_p4 = scmp.lt.s32.totalorder (!%p196_p2), %s228_s21, 399 }
   0xb   : > { %s2962_s20 = smov (!%p224_p3, %s223_s20), 24  ;;  %s2964_s21 = smov (!%p229_p4, %s228_s21), 399 }
   0xc   : > { %s226_s24 = scalar_lea.vmem %s2955_s0, %s2962_s20  ;;  %s2192_s25 = sshll.u32 %s2964_s21, 4 }
   0xd   : > { %s2621_s28 = scalar_lea.vmem %s2956_s1, %s2192_s25  ;;  %239 = sbr.rel (%p1993_p5) target bundleno = 20 (0x14), region = 44 }
  0x12   : > { %v2565_v0 = vmov 0.0  }
  0x13   : > { %240 = vst [vmem:[#allocation2] sm:$0xff] %v2565_v0 }
  0x14 PF: > { %v2256_v1 = vld [vmem:[%s2621_s28 + $0xe4] ss:$16 sps:$4 sm:$0xff]   ;;  %v2260_v3 = vld [vmem:[%s2621_s28 + $0xe0] ss:$16 sps:$4 sm:$0xff]   ;;  %v2566_v37 = vmov 1966171168   ;;  %v408_v39 = vlaneseq }
  0x15   : > { %v2258_v2 = vld [vmem:[%s2621_s28 + $0x2e4] ss:$16 sps:$4 sm:$0xff]   ;;  %1248 = vmatprep.subr.bf16.mxu0 %v2256_v1  ;;  %v2261_v4 = vld [vmem:[%s2621_s28 + $0x2e0] ss:$16 sps:$4 sm:$0xff]   ;;  %v406_v38 = vunpack.c.l.s4 %v2566_v37  ;;  %p2154_p6 = scmp.ne.s32.totalorder %s2606_s19, 4 }
  0x16   : > { %1289 = vmatprep.subr.bf16.mxu1 %v2258_v2  ;;  %v2262_v5 = vld [vmem:[%s2621_s28 + $0xc4] ss:$16 sps:$4 sm:$0xff]   ;;  %1249 = vmatpush1.bf16.msra.mxu0 %v2260_v3  ;;  %v2266_v7 = vld [vmem:[%s2621_s28 + $0xc0] ss:$16 sps:$4 sm:$0xff]   ;;  %v2663_v44 = vshrl.u32 %v408_v39, 7 }
  0x17   : > { %1290 = vmatpush1.bf16.msra.mxu1 %v2261_v4  ;;  %v2264_v6 = vld [vmem:[%s2621_s28 + $0x2c4] ss:$16 sps:$4 sm:$0xff]   ;;  %1250 = vmatprep.subr.bf16.mxu0 %v2262_v5  ;;  %v2267_v8 = vld [vmem:[%s2621_s28 + $0x2c0] ss:$16 sps:$4 sm:$0xff]   ;;  %v407_v43 = vunpack.c.0.s8 %v406_v38  ;;  %v2386_v38 = vld [vmem:[%s2621_s28 + $0x48] ss:$16 sps:$4 sm:$0xff]  }
  0x18   : > { %1291 = vmatprep.subr.bf16.mxu1 %v2264_v6  ;;  %v2268_v9 = vld [vmem:[%s2621_s28 + $0xa4] ss:$16 sps:$4 sm:$0xff]   ;;  %v2272_v11 = vld [vmem:[%s2621_s28 + $0xa0] ss:$16 sps:$4 sm:$0xff]  }
  0x19   : > { %v2270_v10 = vld [vmem:[%s2621_s28 + $0x2a4] ss:$16 sps:$4 sm:$0xff]   ;;  %v2273_v12 = vld [vmem:[%s2621_s28 + $0x2a0] ss:$16 sps:$4 sm:$0xff]   ;;  %v2671_v50 = vsub.s32 %v407_v43, %v2663_v44  ;;  %v2392_v43 = vld [vmem:[%s2621_s28 + $0x28] ss:$16 sps:$4 sm:$0xff]  }
  0x1a   : > { %1251 = vmatpush1.bf16.msra.mxu0 %v2266_v7  ;;  %v2274_v13 = vld [vmem:[%s2621_s28 + $0x84] ss:$16 sps:$4 sm:$0xff]   ;;  %v2278_v15 = vld [vmem:[%s2621_s28 + $0x80] ss:$16 sps:$4 sm:$0xff]  }
  0x1b   : > { %1292 = vmatpush1.bf16.msra.mxu1 %v2267_v8  ;;  %1252 = vmatprep.subr.bf16.mxu0 %v2268_v9  ;;  %v2276_v14 = vld [vmem:[%s2621_s28 + $0x284] ss:$16 sps:$4 sm:$0xff]   ;;  %v2279_v16 = vld [vmem:[%s2621_s28 + $0x280] ss:$16 sps:$4 sm:$0xff]  }
  0x1c   : > { %1293 = vmatprep.subr.bf16.mxu1 %v2270_v10  ;;  %v2280_v17 = vld [vmem:[%s2621_s28 + $0x64] ss:$16 sps:$4 sm:$0xff]   ;;  %v2284_v19 = vld [vmem:[%s2621_s28 + $0x60] ss:$16 sps:$4 sm:$0xff]  }
  0x1d   : > { %v2282_v18 = vld [vmem:[%s2621_s28 + $0x264] ss:$16 sps:$4 sm:$0xff]   ;;  %v2285_v20 = vld [vmem:[%s2621_s28 + $0x260] ss:$16 sps:$4 sm:$0xff]  }
  0x1e   : > { %1253 = vmatpush1.bf16.msra.mxu0 %v2272_v11  ;;  %v2286_v21 = vld [vmem:[%s2621_s28 + $0x44] ss:$16 sps:$4 sm:$0xff]   ;;  %v2290_v23 = vld [vmem:[%s2621_s28 + $0x40] ss:$16 sps:$4 sm:$0xff]  }
  0x1f   : > { %1294 = vmatpush1.bf16.msra.mxu1 %v2273_v12  ;;  %1254 = vmatprep.subr.bf16.mxu0 %v2274_v13  ;;  %v2288_v22 = vld [vmem:[%s2621_s28 + $0x244] ss:$16 sps:$4 sm:$0xff]   ;;  %v2291_v24 = vld [vmem:[%s2621_s28 + $0x240] ss:$16 sps:$4 sm:$0xff]  }
  0x20   : > { %1295 = vmatprep.subr.bf16.mxu1 %v2276_v14  ;;  %v2292_v25 = vld [vmem:[%s2621_s28 + $0x24] ss:$16 sps:$4 sm:$0xff]   ;;  %v2296_v27 = vld [vmem:[%s2621_s28 + $0x20] ss:$16 sps:$4 sm:$0xff]   ;;  %v2358_v14 = vld [vmem:[%s2621_s28 + $0xec] ss:$16 sps:$4 sm:$0xff]  }
  0x21   : > { %v2294_v26 = vld [vmem:[%s2621_s28 + $0x224] ss:$16 sps:$4 sm:$0xff]   ;;  %v2297_v28 = vld [vmem:[%s2621_s28 + $0x220] ss:$16 sps:$4 sm:$0xff]  }
  0x22   : > { %1255 = vmatpush1.bf16.msra.mxu0 %v2278_v15  ;;  %v2298_v29 = vld [vmem:[%s2621_s28 + $0x4] ss:$16 sps:$4 sm:$0xff]   ;;  %v2302_v31 = vld [vmem:[%s2621_s28] ss:$16 sps:$4 sm:$0xff]  }
  0x23   : > { %1296 = vmatpush1.bf16.msra.mxu1 %v2279_v16  ;;  %1256 = vmatprep.subr.bf16.mxu0 %v2280_v17  ;;  %v2300_v30 = vld [vmem:[%s2621_s28 + $0x204] ss:$16 sps:$4 sm:$0xff]   ;;  %v2303_v32 = vld [vmem:[%s2621_s28 + $0x200] ss:$16 sps:$4 sm:$0xff]   ;;  %v2356_v17 = vld [vmem:[%s2621_s28 + $0xe8] ss:$16 sps:$4 sm:$0xff]  }
  0x24   : > { %1297 = vmatprep.subr.bf16.mxu1 %v2282_v18  ;;  %v2304_v33 = vld [vmem:[%s2621_s28 + $0x1e4] ss:$16 sps:$4 sm:$0xff]   ;;  %v2308_v35 = vld [vmem:[%s2621_s28 + $0x1e0] ss:$16 sps:$4 sm:$0xff]  }
  0x25   : > { %v2306_v34 = vld [vmem:[%s2621_s28 + $0x3e4] ss:$16 sps:$4 sm:$0xff]   ;;  %v2309_v36 = vld [vmem:[%s2621_s28 + $0x3e0] ss:$16 sps:$4 sm:$0xff]  }
  0x26   : > { %1257 = vmatpush1.bf16.msra.mxu0 %v2284_v19  ;;  %v2310_v40 = vld [vmem:[%s2621_s28 + $0x1c4] ss:$16 sps:$4 sm:$0xff]   ;;  %v2314_v42 = vld [vmem:[%s2621_s28 + $0x1c0] ss:$16 sps:$4 sm:$0xff]   ;;  %v2364_v19 = vld [vmem:[%s2621_s28 + $0xcc] ss:$16 sps:$4 sm:$0xff]  }
  0x27   : > { %1298 = vmatpush1.bf16.msra.mxu1 %v2285_v20  ;;  %1258 = vmatprep.subr.bf16.mxu0 %v2286_v21  ;;  %v2312_v41 = vld [vmem:[%s2621_s28 + $0x3c4] ss:$16 sps:$4 sm:$0xff]   ;;  %v2315_v45 = vld [vmem:[%s2621_s28 + $0x3c0] ss:$16 sps:$4 sm:$0xff]   ;;  %v2362_v21 = vld [vmem:[%s2621_s28 + $0xc8] ss:$16 sps:$4 sm:$0xff]  }
  0x28   : > { %1299 = vmatprep.subr.bf16.mxu1 %v2288_v22  ;;  %v2316_v46 = vld [vmem:[%s2621_s28 + $0x1a4] ss:$16 sps:$4 sm:$0xff]   ;;  %v2320_v48 = vld [vmem:[%s2621_s28 + $0x1a0] ss:$16 sps:$4 sm:$0xff]  }
  0x29   : > { %v2318_v47 = vld [vmem:[%s2621_s28 + $0x3a4] ss:$16 sps:$4 sm:$0xff]   ;;  %v2321_v49 = vld [vmem:[%s2621_s28 + $0x3a0] ss:$16 sps:$4 sm:$0xff]  }
  0x2a   : > { %1259 = vmatpush1.bf16.msra.mxu0 %v2290_v23  ;;  %v2322_v51 = vld [vmem:[%s2621_s28 + $0x184] ss:$16 sps:$4 sm:$0xff]   ;;  %v2326_v54 = vld [vmem:[%s2621_s28 + $0x180] ss:$16 sps:$4 sm:$0xff]   ;;  %v2370_v23 = vld [vmem:[%s2621_s28 + $0xac] ss:$16 sps:$4 sm:$0xff]  }
  0x2b   : > { %1300 = vmatpush1.bf16.msra.mxu1 %v2291_v24  ;;  %1260 = vmatprep.subr.bf16.mxu0 %v2292_v25  ;;  %v2324_v52 = vld [vmem:[%s2621_s28 + $0x384] ss:$16 sps:$4 sm:$0xff]   ;;  %v2327_v56 = vld [vmem:[%s2621_s28 + $0x380] ss:$16 sps:$4 sm:$0xff]   ;;  %v2567_v24 = vmov 0  }
  0x2c   : > { %1301 = vmatprep.subr.bf16.mxu1 %v2294_v26  ;;  %v2680_v53 = vld [vmem:[%s226_s24] sm:$0x1f]  ;;  %v2368_v26 = vld [vmem:[%s2621_s28 + $0xa8] ss:$16 sps:$4 sm:$0xff]  }
  0x2d   : > { %v411_v55 = vrot.slane %v2680_v53, %v2671_v50  ;;  %v2328_v57 = vld [vmem:[%s2621_s28 + $0x164] ss:$16 sps:$4 sm:$0xff]   ;;  %v2332_v60 = vld [vmem:[%s2621_s28 + $0x160] ss:$16 sps:$4 sm:$0xff]  }
  0x2e   : > { %1261 = vmatpush1.bf16.msra.mxu0 %v2296_v27  ;;  %v2330_v58 = vld [vmem:[%s2621_s28 + $0x364] ss:$16 sps:$4 sm:$0xff]   ;;  %v2333_v62 = vld [vmem:[%s2621_s28 + $0x360] ss:$16 sps:$4 sm:$0xff]  }
  0x2f   : > { %1302 = vmatpush1.bf16.msra.mxu1 %v2297_v28  ;;  %1262 = vmatprep.subr.bf16.mxu0 %v2298_v29  ;;  %v419_v59 = vcombine.high %v411_v55, %v411_v55  ;;  %v2334_v63 = vld [vmem:[%s2621_s28 + $0x144] ss:$16 sps:$4 sm:$0xff]   ;;  %v2338_v2 = vld [vmem:[%s2621_s28 + $0x140] ss:$16 sps:$4 sm:$0xff]   ;;  %v2706_v11 = vrot.slane %v411_v55, %v2671_v50  ;;  %v2376_v28 = vld [vmem:[%s2621_s28 + $0x8c] ss:$16 sps:$4 sm:$0xff]  }
  0x30   : > { %1303 = vmatprep.subr.bf16.mxu1 %v2300_v30  ;;  %v2336_v0 = vld [vmem:[%s2621_s28 + $0x344] ss:$16 sps:$4 sm:$0xff]   ;;  %v2339_v3 = vld [vmem:[%s2621_s28 + $0x340] ss:$16 sps:$4 sm:$0xff]   ;;  %v2374_v30 = vld [vmem:[%s2621_s28 + $0x88] ss:$16 sps:$4 sm:$0xff]  }
  0x31   : > { %v440_v61 = vrot.slane %v419_v59, %v2671_v50  ;;  %v2340_v4 = vld [vmem:[%s2621_s28 + $0x124] ss:$16 sps:$4 sm:$0xff]   ;;  %v2344_v6 = vld [vmem:[%s2621_s28 + $0x120] ss:$16 sps:$4 sm:$0xff]   ;;  %v2713_v15 = vcombine.high %v2706_v11, %v2706_v11  ;;  %v2404_v55 = vld [vmem:[%s2621_s28 + $0x2e8] ss:$16 sps:$4 sm:$0xff]  }
  0x32   : > { %1263 = vmatpush1.bf16.msra.mxu0 %v2302_v31  ;;  %v2342_v5 = vld [vmem:[%s2621_s28 + $0x324] ss:$16 sps:$4 sm:$0xff]   ;;  %v2345_v7 = vld [vmem:[%s2621_s28 + $0x320] ss:$16 sps:$4 sm:$0xff]   ;;  %v2415_v59 = vld [vmem:[%s2621_s28 + $0x1ac] ss:$16 sps:$4 sm:$0xff]  }
  0x33   : > { %1304 = vmatpush1.bf16.msra.mxu1 %v2303_v32  ;;  %1264 = vmatprep.subr.bf16.mxu0 %v2304_v33  ;;  %v2693_v1 = vcombine.high %v440_v61, %v440_v61  ;;  %v2346_v8 = vld [vmem:[%s2621_s28 + $0x104] ss:$16 sps:$4 sm:$0xff]   ;;  %v2350_v10 = vld [vmem:[%s2621_s28 + $0x100] ss:$16 sps:$4 sm:$0xff]   ;;  %v2382_v32 = vld [vmem:[%s2621_s28 + $0x6c] ss:$16 sps:$4 sm:$0xff]  }
  0x34   : > { %1305 = vmatprep.subr.bf16.mxu1 %v2306_v34  ;;  %1280 = vmatprep.mubr.bf16.mxu0 %v440_v61  ;;  %v2348_v9 = vld [vmem:[%s2621_s28 + $0x304] ss:$16 sps:$4 sm:$0xff]   ;;  %v2351_v12 = vld [vmem:[%s2621_s28 + $0x300] ss:$16 sps:$4 sm:$0xff]   ;;  %v2380_v34 = vld [vmem:[%s2621_s28 + $0x68] ss:$16 sps:$4 sm:$0xff]  }
  0x35   : > { %1321 = vmatprep.mubr.bf16.mxu1 %v2693_v1  ;;  %v2355_v13 = vld [vmem:[%s2621_s28 + $0x4e4] ss:$16 sps:$4 sm:$0xff]   ;;  %v2353_v16 = vld [vmem:[%s2621_s28 + $0x4e0] ss:$16 sps:$4 sm:$0xff]  }
  0x36   : > { %1265 = vmatpush2.bf16.msra.mxu0 %v2308_v35  ;;  %v2361_v18 = vld [vmem:[%s2621_s28 + $0x4c4] ss:$16 sps:$4 sm:$0xff]   ;;  %v2359_v20 = vld [vmem:[%s2621_s28 + $0x4c0] ss:$16 sps:$4 sm:$0xff]  }
  0x37   : > { %1306 = vmatpush2.bf16.msra.mxu1 %v2309_v36  ;;  %1266 = vmatprep.subr.bf16.mxu0 %v2310_v40  ;;  %v2367_v22 = vld [vmem:[%s2621_s28 + $0x4a4] ss:$16 sps:$4 sm:$0xff]   ;;  %v2365_v25 = vld [vmem:[%s2621_s28 + $0x4a0] ss:$16 sps:$4 sm:$0xff]   ;;  %v2388_v36 = vld [vmem:[%s2621_s28 + $0x4c] ss:$16 sps:$4 sm:$0xff]  }
  0x38   : > { %1307 = vmatprep.subr.bf16.mxu1 %v2312_v41  ;;  %v2373_v27 = vld [vmem:[%s2621_s28 + $0x484] ss:$16 sps:$4 sm:$0xff]   ;;  %v2371_v29 = vld [vmem:[%s2621_s28 + $0x480] ss:$16 sps:$4 sm:$0xff]   ;;  %v2394_v40 = vld [vmem:[%s2621_s28 + $0x2c] ss:$16 sps:$4 sm:$0xff]   ;;  %v404_v41 = vcombine.high %v2680_v53, %v2680_v53 }
  0x39   : > { %v2379_v31 = vld [vmem:[%s2621_s28 + $0x464] ss:$16 sps:$4 sm:$0xff]   ;;  %v2377_v33 = vld [vmem:[%s2621_s28 + $0x460] ss:$16 sps:$4 sm:$0xff]  }
  0x3a   : > { %1267 = vmatpush2.bf16.msra.mxu0 %v2314_v42  ;;  %v2385_v35 = vld [vmem:[%s2621_s28 + $0x444] ss:$16 sps:$4 sm:$0xff]   ;;  %v2383_v37 = vld [vmem:[%s2621_s28 + $0x440] ss:$16 sps:$4 sm:$0xff]  }
  0x3b   : > { %1308 = vmatpush2.bf16.msra.mxu1 %v2315_v45  ;;  %1268 = vmatprep.subr.bf16.mxu0 %v2316_v46  ;;  %v2391_v39 = vld [vmem:[%s2621_s28 + $0x424] ss:$16 sps:$4 sm:$0xff]   ;;  %v2389_v42 = vld [vmem:[%s2621_s28 + $0x420] ss:$16 sps:$4 sm:$0xff]   ;;  %v2400_v46 = vld [vmem:[%s2621_s28 + $0xc] ss:$16 sps:$4 sm:$0xff]  }
  0x3c   : > { %1309 = vmatprep.subr.bf16.mxu1 %v2318_v47  ;;  %v2397_v45 = vld [vmem:[%s2621_s28 + $0x404] ss:$16 sps:$4 sm:$0xff]   ;;  %v2395_v47 = vld [vmem:[%s2621_s28 + $0x400] ss:$16 sps:$4 sm:$0xff]  }
  0x3e   : > { %1269 = vmatpush2.bf16.msra.mxu0 %v2320_v48  ;;  %v418_v48 = vrot.slane %v404_v41, %v2671_v50  ;;  %v2484_v41 = vld [vmem:[%s2621_s28 + $0x44c] ss:$16 sps:$4 sm:$0xff]  }
  0x3f   : > { %1310 = vmatpush2.bf16.msra.mxu1 %v2321_v49  ;;  %1270 = vmatprep.subr.bf16.mxu0 %v2322_v51  ;;  %v2398_v49 = vld [vmem:[%s2621_s28 + $0x8] ss:$16 sps:$4 sm:$0xff]   ;;  %v2403_v51 = vld [vmem:[%s2621_s28 + $0x1ec] ss:$16 sps:$4 sm:$0xff]  }
  0x40   : > { %1311 = vmatprep.subr.bf16.mxu1 %v2324_v52  ;;  %v2406_v52 = vld [vmem:[%s2621_s28 + $0x2ec] ss:$16 sps:$4 sm:$0xff]   ;;  %v2754_v53 = vrot.slane %v418_v48, %v2671_v50  ;;  %v2410_v50 = vld [vmem:[%s2621_s28 + $0x2c8] ss:$16 sps:$4 sm:$0xff]  }
  0x41   : > { %v2488_v48 = vld [vmem:[%s2621_s28 + $0x428] ss:$16 sps:$4 sm:$0xff]  }
  0x42   : > { %1271 = vmatpush2.bf16.msra.mxu0 %v2326_v54  ;;  %v2401_v54 = vld [vmem:[%s2621_s28 + $0x1e8] ss:$16 sps:$4 sm:$0xff]  }
  0x43   : > { %1312 = vmatpush2.bf16.msra.mxu1 %v2327_v56  ;;  %1272 = vmatprep.subr.bf16.mxu0 %v2328_v57  ;;  %v2409_v56 = vld [vmem:[%s2621_s28 + $0x1cc] ss:$16 sps:$4 sm:$0xff]  }
  0x44   : > { %1313 = vmatprep.subr.bf16.mxu1 %v2330_v58  ;;  %v2412_v57 = vld [vmem:[%s2621_s28 + $0x2cc] ss:$16 sps:$4 sm:$0xff]   ;;  %v2407_v58 = vld [vmem:[%s2621_s28 + $0x1c8] ss:$16 sps:$4 sm:$0xff]  }
  0x46   : > { %1273 = vmatpush2.bf16.msra.mxu0 %v2332_v60  ;;  %v2418_v60 = vld [vmem:[%s2621_s28 + $0x2ac] ss:$16 sps:$4 sm:$0xff]  }
  0x47   : > { %1314 = vmatpush2.bf16.msra.mxu1 %v2333_v62  ;;  %1274 = vmatprep.subr.bf16.mxu0 %v2334_v63  ;;  %v2416_v62 = vld [vmem:[%s2621_s28 + $0x2a8] ss:$16 sps:$4 sm:$0xff]   ;;  %v2421_v63 = vld [vmem:[%s2621_s28 + $0x18c] ss:$16 sps:$4 sm:$0xff]  }
  0x48   : > { %1315 = vmatprep.subr.bf16.mxu1 %v2336_v0  ;;  %v2424_v0 = vld [vmem:[%s2621_s28 + $0x28c] ss:$16 sps:$4 sm:$0xff]  }
  0x4a   : > { %1275 = vmatpush2.bf16.msra.mxu0 %v2338_v2  ;;  %v2419_v2 = vld [vmem:[%s2621_s28 + $0x188] ss:$16 sps:$4 sm:$0xff]  }
  0x4b   : > { %1316 = vmatpush2.bf16.msra.mxu1 %v2339_v3  ;;  %1276 = vmatprep.subr.bf16.mxu0 %v2340_v4  ;;  %v2422_v3 = vld [vmem:[%s2621_s28 + $0x288] ss:$16 sps:$4 sm:$0xff]   ;;  %v2430_v4 = vld [vmem:[%s2621_s28 + $0x26c] ss:$16 sps:$4 sm:$0xff]  }
  0x4c   : > { %1317 = vmatprep.subr.bf16.mxu1 %v2342_v5  ;;  %v2425_v5 = vld [vmem:[%s2621_s28 + $0x168] ss:$16 sps:$4 sm:$0xff]  }
  0x4e   : > { %1277 = vmatpush2.bf16.msra.mxu0 %v2344_v6  ;;  %v2428_v6 = vld [vmem:[%s2621_s28 + $0x268] ss:$16 sps:$4 sm:$0xff]  }
  0x4f   : > { %1318 = vmatpush2.bf16.msra.mxu1 %v2345_v7  ;;  %1278 = vmatprep.subr.bf16.mxu0 %v2346_v8  ;;  %v2433_v7 = vld [vmem:[%s2621_s28 + $0x14c] ss:$16 sps:$4 sm:$0xff]  }
  0x50   : > { %1319 = vmatprep.subr.bf16.mxu1 %v2348_v9  ;;  %v2436_v8 = vld [vmem:[%s2621_s28 + $0x24c] ss:$16 sps:$4 sm:$0xff]   ;;  %v2431_v9 = vld [vmem:[%s2621_s28 + $0x148] ss:$16 sps:$4 sm:$0xff]  }
  0x52   : > { %1279 = vmatpush2.bf16.msra.mxu0 %v2350_v10  ;;  %v2434_v10 = vld [vmem:[%s2621_s28 + $0x248] ss:$16 sps:$4 sm:$0xff]  }
  0x53   : > { %1320 = vmatpush2.bf16.msra.mxu1 %v2351_v12  ;;  %1330 = vmatprep.subr.bf16.mxu0 %v2355_v13  ;;  %v2439_v12 = vld [vmem:[%s2621_s28 + $0x12c] ss:$16 sps:$4 sm:$0xff]  }
  0x54   : > { %1371 = vmatprep.subr.bf16.mxu1 %v2358_v14  ;;  %v2442_v13 = vld [vmem:[%s2621_s28 + $0x22c] ss:$16 sps:$4 sm:$0xff]   ;;  %v2437_v14 = vld [vmem:[%s2621_s28 + $0x128] ss:$16 sps:$4 sm:$0xff]  }
  0x55   : > { %1281 = vmatmul.mubr.bf16.vlgmr.msra.gmra.mxu0 %v2706_v11 }
  0x56   : > { %1322 = vmatmul.mubr.bf16.vlgmr.msra.gmra.mxu1 %v2713_v15  ;;  %1331 = vmatpush1.bf16.msra.mxu0 %v2353_v16  ;;  %v2440_v16 = vld [vmem:[%s2621_s28 + $0x228] ss:$16 sps:$4 sm:$0xff]  }
  0x57   : > { %1372 = vmatpush1.bf16.msra.mxu1 %v2356_v17  ;;  %1332 = vmatprep.subr.bf16.mxu0 %v2361_v18  ;;  %v2445_v17 = vld [vmem:[%s2621_s28 + $0x10c] ss:$16 sps:$4 sm:$0xff]  }
  0x58   : > { %1373 = vmatprep.subr.bf16.mxu1 %v2364_v19  ;;  %1362 = vmatprep.mubr.bf16.mxu0 %v2567_v24  ;;  %v2448_v18 = vld [vmem:[%s2621_s28 + $0x20c] ss:$16 sps:$4 sm:$0xff]   ;;  %v2443_v19 = vld [vmem:[%s2621_s28 + $0x108] ss:$16 sps:$4 sm:$0xff]  }
  0x59   : > { %1403 = vmatprep.mubr.bf16.mxu1 %v440_v61  ;;  %v2413_v61 = vld [vmem:[%s2621_s28 + $0x1a8] ss:$16 sps:$4 sm:$0xff]  }
  0x5a   : > { %1333 = vmatpush1.bf16.msra.mxu0 %v2359_v20  ;;  %v2446_v20 = vld [vmem:[%s2621_s28 + $0x208] ss:$16 sps:$4 sm:$0xff]  }
  0x5b   : > { %1374 = vmatpush1.bf16.msra.mxu1 %v2362_v21  ;;  %1334 = vmatprep.subr.bf16.mxu0 %v2367_v22  ;;  %v2451_v21 = vld [vmem:[%s2621_s28 + $0x3ec] ss:$16 sps:$4 sm:$0xff]  }
  0x5c   : > { %1375 = vmatprep.subr.bf16.mxu1 %v2370_v23  ;;  %v2454_v22 = vld [vmem:[%s2621_s28 + $0x4ec] ss:$16 sps:$4 sm:$0xff]   ;;  %v2449_v23 = vld [vmem:[%s2621_s28 + $0x3e8] ss:$16 sps:$4 sm:$0xff]  }
  0x5e   : > { %1335 = vmatpush1.bf16.msra.mxu0 %v2365_v25  ;;  %v2452_v25 = vld [vmem:[%s2621_s28 + $0x4e8] ss:$16 sps:$4 sm:$0xff]  }
  0x5f   : > { %1376 = vmatpush1.bf16.msra.mxu1 %v2368_v26  ;;  %1336 = vmatprep.subr.bf16.mxu0 %v2373_v27  ;;  %v2457_v26 = vld [vmem:[%s2621_s28 + $0x3cc] ss:$16 sps:$4 sm:$0xff]  }
  0x60   : > { %1377 = vmatprep.subr.bf16.mxu1 %v2376_v28  ;;  %v2460_v27 = vld [vmem:[%s2621_s28 + $0x4cc] ss:$16 sps:$4 sm:$0xff]   ;;  %v2455_v28 = vld [vmem:[%s2621_s28 + $0x3c8] ss:$16 sps:$4 sm:$0xff]  }
  0x62   : > { %1337 = vmatpush1.bf16.msra.mxu0 %v2371_v29  ;;  %v2458_v29 = vld [vmem:[%s2621_s28 + $0x4c8] ss:$16 sps:$4 sm:$0xff]  }
  0x63   : > { %1378 = vmatpush1.bf16.msra.mxu1 %v2374_v30  ;;  %1338 = vmatprep.subr.bf16.mxu0 %v2379_v31  ;;  %v2463_v30 = vld [vmem:[%s2621_s28 + $0x3ac] ss:$16 sps:$4 sm:$0xff]  }
  0x64   : > { %1379 = vmatprep.subr.bf16.mxu1 %v2382_v32  ;;  %v2466_v31 = vld [vmem:[%s2621_s28 + $0x4ac] ss:$16 sps:$4 sm:$0xff]   ;;  %v2461_v32 = vld [vmem:[%s2621_s28 + $0x3a8] ss:$16 sps:$4 sm:$0xff]  }
  0x66   : > { %1339 = vmatpush1.bf16.msra.mxu0 %v2377_v33  ;;  %v2469_v33 = vld [vmem:[%s2621_s28 + $0x38c] ss:$16 sps:$4 sm:$0xff]  }
  0x67   : > { %1380 = vmatpush1.bf16.msra.mxu1 %v2380_v34  ;;  %1340 = vmatprep.subr.bf16.mxu0 %v2385_v35  ;;  %v2472_v34 = vld [vmem:[%s2621_s28 + $0x48c] ss:$16 sps:$4 sm:$0xff]   ;;  %v2467_v35 = vld [vmem:[%s2621_s28 + $0x388] ss:$16 sps:$4 sm:$0xff]  }
  0x68   : > { %1381 = vmatprep.subr.bf16.mxu1 %v2388_v36  ;;  %v2470_v36 = vld [vmem:[%s2621_s28 + $0x488] ss:$16 sps:$4 sm:$0xff]  }
  0x6a   : > { %1341 = vmatpush1.bf16.msra.mxu0 %v2383_v37  ;;  %v2478_v37 = vld [vmem:[%s2621_s28 + $0x46c] ss:$16 sps:$4 sm:$0xff]  }
  0x6b   : > { %1382 = vmatpush1.bf16.msra.mxu1 %v2386_v38  ;;  %1342 = vmatprep.subr.bf16.mxu0 %v2391_v39  ;;  %v2473_v38 = vld [vmem:[%s2621_s28 + $0x368] ss:$16 sps:$4 sm:$0xff]  }
  0x6c   : > { %1383 = vmatprep.subr.bf16.mxu1 %v2394_v40  ;;  %v2476_v39 = vld [vmem:[%s2621_s28 + $0x468] ss:$16 sps:$4 sm:$0xff]   ;;  %v2481_v40 = vld [vmem:[%s2621_s28 + $0x34c] ss:$16 sps:$4 sm:$0xff]  }
  0x6e   : > { %1343 = vmatpush1.bf16.msra.mxu0 %v2389_v42  ;;  %v2479_v42 = vld [vmem:[%s2621_s28 + $0x348] ss:$16 sps:$4 sm:$0xff]  }
  0x6f   : > { %1384 = vmatpush1.bf16.msra.mxu1 %v2392_v43  ;;  %1344 = vmatprep.subr.bf16.mxu0 %v2397_v45  ;;  %v2482_v43 = vld [vmem:[%s2621_s28 + $0x448] ss:$16 sps:$4 sm:$0xff]   ;;  %v2487_v45 = vld [vmem:[%s2621_s28 + $0x32c] ss:$16 sps:$4 sm:$0xff]  }
  0x70   : > { %1385 = vmatprep.subr.bf16.mxu1 %v2400_v46  ;;  %v2490_v46 = vld [vmem:[%s2621_s28 + $0x42c] ss:$16 sps:$4 sm:$0xff]  }
  0x72   : > { %1345 = vmatpush1.bf16.msra.mxu0 %v2395_v47  ;;  %v2485_v47 = vld [vmem:[%s2621_s28 + $0x328] ss:$16 sps:$4 sm:$0xff]  }
  0x73   : > { %1386 = vmatpush1.bf16.msra.mxu1 %v2398_v49  ;;  %1412 = vmatprep.subr.bf16.mxu0 %v2406_v52  ;;  %v2493_v49 = vld [vmem:[%s2621_s28 + $0x30c] ss:$16 sps:$4 sm:$0xff]   ;;  %v2491_v52 = vld [vmem:[%s2621_s28 + $0x308] ss:$16 sps:$4 sm:$0xff]  }
  0x74   : > { %1387 = vmatprep.subr.bf16.mxu1 %v2403_v51  ;;  %v2496_v51 = vld [vmem:[%s2621_s28 + $0x40c] ss:$16 sps:$4 sm:$0xff]  }
  0x75   : > { %1363 = vmatmul.mubr.bf16.vlgmr.msra.gmra.mxu0 %v2754_v53 }
  0x76   : > { %1413 = vmatpush1.bf16.msra.mxu0 %v2404_v55  ;;  %1444 = vmatprep.mubr.bf16.mxu0 %v2693_v1  ;;  %v2427_v1 = vld [vmem:[%s2621_s28 + $0x16c] ss:$16 sps:$4 sm:$0xff]  }
  0x77   : > { %1388 = vmatpush2.bf16.msra.mxu1 %v2401_v54  ;;  %1414 = vmatprep.subr.bf16.mxu0 %v2412_v57  ;;  %v2494_v54 = vld [vmem:[%s2621_s28 + $0x408] ss:$16 sps:$4 sm:$0xff]  }
  0x78   : > { %1389 = vmatprep.subr.bf16.mxu1 %v2409_v56 }
  0x7a   : > { %1415 = vmatpush1.bf16.msra.mxu0 %v2410_v50 }
  0x7b   : > { %1390 = vmatpush2.bf16.msra.mxu1 %v2407_v58  ;;  %1416 = vmatprep.subr.bf16.mxu0 %v2418_v60 }
  0x7c   : > { %1391 = vmatprep.subr.bf16.mxu1 %v2415_v59 }
  0x7e   : > { %1417 = vmatpush1.bf16.msra.mxu0 %v2416_v62 }
  0x7f   : > { %1392 = vmatpush2.bf16.msra.mxu1 %v2413_v61  ;;  %1418 = vmatprep.subr.bf16.mxu0 %v2424_v0 }
  0x80   : > { %1393 = vmatprep.subr.bf16.mxu1 %v2421_v63 }
  0x82   : > { %1419 = vmatpush1.bf16.msra.mxu0 %v2422_v3 }
  0x83   : > { %1394 = vmatpush2.bf16.msra.mxu1 %v2419_v2  ;;  %1420 = vmatprep.subr.bf16.mxu0 %v2430_v4 }
  0x84   : > { %1395 = vmatprep.subr.bf16.mxu1 %v2427_v1 }
  0x86   : > { %1421 = vmatpush1.bf16.msra.mxu0 %v2428_v6 }
  0x87   : > { %1396 = vmatpush2.bf16.msra.mxu1 %v2425_v5  ;;  %1422 = vmatprep.subr.bf16.mxu0 %v2436_v8 }
  0x88   : > { %1397 = vmatprep.subr.bf16.mxu1 %v2433_v7 }
  0x8a   : > { %1423 = vmatpush1.bf16.msra.mxu0 %v2434_v10 }
  0x8b   : > { %1398 = vmatpush2.bf16.msra.mxu1 %v2431_v9  ;;  %1424 = vmatprep.subr.bf16.mxu0 %v2442_v13  ;;  %v2568_v9 = vmov 1983009808  }
  0x8c   : > { %1399 = vmatprep.subr.bf16.mxu1 %v2439_v12  ;;  %v1501_v10 = vunpack.c.l.s4 %v2568_v9 }
  0x8e   : > { %1425 = vmatpush1.bf16.msra.mxu0 %v2440_v16 }
  0x8f   : > { %1400 = vmatpush2.bf16.msra.mxu1 %v2437_v14  ;;  %1426 = vmatprep.subr.bf16.mxu0 %v2448_v18  ;;  %v1502_v14 = vunpack.c.0.s8 %v1501_v10 }
  0x90   : > { %1401 = vmatprep.subr.bf16.mxu1 %v2445_v17 }
  0x92   : > { %1427 = vmatpush1.bf16.msra.mxu0 %v2446_v20 }
  0x93   : > { %1402 = vmatpush2.bf16.msra.mxu1 %v2443_v19  ;;  %1428 = vmatprep.subr.bf16.mxu0 %v2451_v21 }
  0x94   : > { %1453 = vmatprep.subr.bf16.mxu1 %v2454_v22  ;;  %v2825_v22 = vsub.s32 %v1502_v14, %v2663_v44 }
  0x96   : > { %1404 = vmatmul.mubr.bf16.vlgmr.msra.gmra.mxu1 %v2706_v11  ;;  %1429 = vmatpush2.bf16.msra.mxu0 %v2449_v23  ;;  %v2464_v11 = vld [vmem:[%s2621_s28 + $0x4a8] ss:$16 sps:$4 sm:$0xff]  }
  0x97   : > { %1454 = vmatpush1.bf16.msra.mxu1 %v2452_v25  ;;  %1430 = vmatprep.subr.bf16.mxu0 %v2457_v26 }
  0x98   : > { %1455 = vmatprep.subr.bf16.mxu1 %v2460_v27  ;;  %1485 = vmatprep.mubr.bf16.mxu1 %v2567_v24  ;;  %v2475_v24 = vld [vmem:[%s2621_s28 + $0x36c] ss:$16 sps:$4 sm:$0xff]  }
  0x9a   : > { %1431 = vmatpush2.bf16.msra.mxu0 %v2455_v28 }
  0x9b   : > { %1456 = vmatpush1.bf16.msra.mxu1 %v2458_v29  ;;  %1432 = vmatprep.subr.bf16.mxu0 %v2463_v30 }
  0x9c   : > { %1457 = vmatprep.subr.bf16.mxu1 %v2466_v31  ;;  %v241_v31 = vld [vmem:[#allocation2] sm:$0xff] }
  0x9e   : > { %1433 = vmatpush2.bf16.msra.mxu0 %v2461_v32 }
  0x9f   : > { %1458 = vmatpush1.bf16.msra.mxu1 %v2464_v11  ;;  %1434 = vmatprep.subr.bf16.mxu0 %v2469_v33 }
  0xa0   : > { %1459 = vmatprep.subr.bf16.mxu1 %v2472_v34 }
  0xa2   : > { %1435 = vmatpush2.bf16.msra.mxu0 %v2467_v35 }
  0xa3   : > { %1460 = vmatpush1.bf16.msra.mxu1 %v2470_v36  ;;  %1436 = vmatprep.subr.bf16.mxu0 %v2475_v24 }
  0xa4   : > { %1461 = vmatprep.subr.bf16.mxu1 %v2478_v37 }
  0xa6   : > { %1437 = vmatpush2.bf16.msra.mxu0 %v2473_v38 }
  0xa7   : > { %1462 = vmatpush1.bf16.msra.mxu1 %v2476_v39  ;;  %1438 = vmatprep.subr.bf16.mxu0 %v2481_v40 }
  0xa8   : > { %1463 = vmatprep.subr.bf16.mxu1 %v2484_v41 }
  0xaa   : > { %1439 = vmatpush2.bf16.msra.mxu0 %v2479_v42 }
  0xab   : > { %1464 = vmatpush1.bf16.msra.mxu1 %v2482_v43  ;;  %1440 = vmatprep.subr.bf16.mxu0 %v2487_v45 }
  0xac   : > { %1465 = vmatprep.subr.bf16.mxu1 %v2490_v46 }
  0xae   : > { %1441 = vmatpush2.bf16.msra.mxu0 %v2485_v47 }
  0xaf   : > { %1466 = vmatpush1.bf16.msra.mxu1 %v2488_v48  ;;  %1442 = vmatprep.subr.bf16.mxu0 %v2493_v49 }
  0xb0   : > { %1467 = vmatprep.subr.bf16.mxu1 %v2496_v51 }
  0xb2   : > { %1443 = vmatpush2.bf16.msra.mxu0 %v2491_v52 }
  0xb3   : > { %1468 = vmatpush1.bf16.msra.mxu1 %v2494_v54 }
  0xb5   : > { %1445 = vmatmul.mubr.bf16.vlgmr.msra.gmra.mxu0 %v2713_v15 }
  0xb6   : > { %1486 = vmatmul.mubr.bf16.vlgmr.msra.gmra.mxu1 %v2754_v53 }
 0x115   : > { %v1282_v55 = vpop.f32.mrf.mxu0 }
 0x116   : > { %v1323_v56 = vpop.f32.mrf.mxu1 }
 0x117   : > { %v1324_v57 = vadd.f32 %v1323_v56, %v1282_v55  ;;  %v1284_v58 = vpop.f32.mrf.mxu0 }
 0x118   : > { %v1325_v50 = vpop.f32.mrf.mxu1 }
 0x119   : > { %v1326_v59 = vadd.f32 %v1325_v50, %v1284_v58  ;;  %v1286_v60 = vpop.f32.mrf.mxu0 }
 0x11a   : > { %v1327_v61 = vpop.f32.mrf.mxu1 }
 0x11b   : > { %v1287_v62 = vpop.f32.mrf.mxu0 }
 0x11c   : > { %v1328_v63 = vpop.f32.mrf.mxu1 }
 0x135   : > { %v1364_v0 = vpop.f32.mrf.mxu0 }
 0x136   : > { %v1365_v2 = vadd.f32 %v1364_v0, %v1324_v57 }
 0x137   : > { %v1366_v3 = vpop.f32.mrf.mxu0 }
 0x138   : > { %v1367_v1 = vadd.f32 %v1366_v3, %v1326_v59 }
 0x139   : > { %v1368_v4 = vpop.f32.mrf.mxu0 }
 0x13a   : > { %v1498_v5 = vcombine.low %v1365_v2, %v1367_v1 }
 0x13b   : > { %v1369_v6 = vpop.f32.mrf.mxu0 }
 0x13c   : > { %v1506_v29 = vrot.slane %v1498_v5, %v2825_v22 }
 0x156   : > { %v1405_v15 = vpop.f32.mrf.mxu1 }
 0x158   : > { %v1407_v7 = vpop.f32.mrf.mxu1 }
 0x15a   : > { %v1409_v53 = vpop.f32.mrf.mxu1 }
 0x15c   : > { %v1410_v8 = vpop.f32.mrf.mxu1 }
 0x175   : > { %v1446_v12 = vpop.f32.mrf.mxu0 }
 0x176   : > { %v1487_v13 = vpop.f32.mrf.mxu1  ;;  %v1447_v16 = vadd.f32 %v1446_v12, %v1405_v15 }
 0x177   : > { %v1448_v17 = vpop.f32.mrf.mxu0 }
 0x178   : > { %v1489_v18 = vpop.f32.mrf.mxu1  ;;  %v1449_v19 = vadd.f32 %v1448_v17, %v1407_v7  ;;  %v1488_v23 = vadd.f32 %v1487_v13, %v1447_v16 }
 0x179   : > { %v1450_v20 = vpop.f32.mrf.mxu0 }
 0x17a   : > { %v1491_v21 = vpop.f32.mrf.mxu1  ;;  %v1490_v25 = vadd.f32 %v1489_v18, %v1449_v19 }
 0x17b   : > { %v1451_v26 = vpop.f32.mrf.mxu0 }
 0x17c   : > { %v1492_v27 = vpop.f32.mrf.mxu1  ;;  %v1499_v28 = vcombine.low %v1488_v23, %v1490_v25 }
 0x17e   : > { %v1513_v30 = vrot.slane %v1499_v28, %v2825_v22 }
 0x180   : > { %v1514_v32 = vcombine.low %v1506_v29, %v1513_v30  ;;  %1521 = sbr.rel (%p2154_p6) target bundleno = 625 (0x271), region = 48 }
 0x182   : > { %v1516_v11 = vadd.f32 %v1514_v32, %v241_v31 }
 0x184   : > { %1517 = vst [vmem:[#allocation2] sm:$0xff] %v1516_v11 }
 0x185   : > { %v2497_v33 = vld [vmem:[%s2958_s3 + $0x78] sm:$0xff]   ;;  %v2501_v24 = vld [vmem:[%s2958_s3 + $0x70] sm:$0xff]   ;;  %v2505_v40 = vld [vmem:[%s2958_s3 + $0x68] sm:$0xff]   ;;  %v1527_v61 = vsub.s32 0, %v2663_v44  ;;  %v1531_v63 = vsub.s32 1, %v2663_v44  ;;  %v1535_v2 = vsub.s32 2, %v2663_v44 }
 0x186   : > { %v2498_v34 = vld [vmem:[%s2958_s3 + $0xf8] sm:$0xff]   ;;  %2193 = vmatprep.subr.bf16.mxu0 %v2497_v33  ;;  %v2502_v37 = vld [vmem:[%s2958_s3 + $0xf0] sm:$0xff]   ;;  %v2506_v41 = vld [vmem:[%s2958_s3 + $0xe8] sm:$0xff]   ;;  %v1539_v1 = vsub.s32 3, %v2663_v44  ;;  %vm1930_vm0 = vcmask 41984  }
 0x187   : > { %v2499_v35 = vld [vmem:[%s2958_s3 + $0x38] sm:$0xff]   ;;  %2215 = vmatprep.subr.bf16.mxu1 %v2498_v34  ;;  %v2503_v38 = vld [vmem:[%s2958_s3 + $0x30] sm:$0xff]   ;;  %v2507_v42 = vld [vmem:[%s2958_s3 + $0x28] sm:$0xff]  }
 0x188   : > { %v2500_v36 = vld [vmem:[%s2958_s3 + $0xb8] sm:$0xff]   ;;  %2194 = vmatpush3.bf16.msra.mxu0 %v2499_v35  ;;  %v2504_v39 = vld [vmem:[%s2958_s3 + $0xb0] sm:$0xff]   ;;  %v2508_v43 = vld [vmem:[%s2958_s3 + $0xa8] sm:$0xff]  }
 0x189   : > { %2216 = vmatpush3.bf16.msra.mxu1 %v2500_v36  ;;  %2195 = vmatprep.subr.bf16.mxu0 %v2501_v24  ;;  %v2509_v45 = vld [vmem:[%s2958_s3 + $0x60] sm:$0xff]   ;;  %v2513_v49 = vld [vmem:[%s2958_s3 + $0x58] sm:$0xff]   ;;  %v2517_v55 = vld [vmem:[%s2958_s3 + $0x50] sm:$0xff]  }
 0x18a   : > { %2217 = vmatprep.subr.bf16.mxu1 %v2502_v37  ;;  %v2510_v46 = vld [vmem:[%s2958_s3 + $0xe0] sm:$0xff]   ;;  %v2514_v51 = vld [vmem:[%s2958_s3 + $0xd8] sm:$0xff]   ;;  %v2518_v56 = vld [vmem:[%s2958_s3 + $0xd0] sm:$0xff]  }
 0x18b   : > { %v2511_v47 = vld [vmem:[%s2958_s3 + $0x20] sm:$0xff]   ;;  %v2515_v52 = vld [vmem:[%s2958_s3 + $0x18] sm:$0xff]   ;;  %v2519_v57 = vld [vmem:[%s2958_s3 + $0x10] sm:$0xff]  }
 0x18c   : > { %2196 = vmatpush3.bf16.msra.mxu0 %v2503_v38  ;;  %v2512_v48 = vld [vmem:[%s2958_s3 + $0xa0] sm:$0xff]   ;;  %v2516_v54 = vld [vmem:[%s2958_s3 + $0x98] sm:$0xff]   ;;  %v2520_v58 = vld [vmem:[%s2958_s3 + $0x90] sm:$0xff]  }
 0x18d   : > { %2218 = vmatpush3.bf16.msra.mxu1 %v2504_v39  ;;  %2197 = vmatprep.subr.bf16.mxu0 %v2505_v40  ;;  %v2521_v50 = vld [vmem:[%s2958_s3 + $0x48] sm:$0xff]   ;;  %v2525_v0 = vld [vmem:[%s2958_s3 + $0x40] sm:$0xff]  }
 0x18e   : > { %2219 = vmatprep.subr.bf16.mxu1 %v2506_v41  ;;  %v2522_v59 = vld [vmem:[%s2958_s3 + $0xc8] sm:$0xff]   ;;  %v2526_v3 = vld [vmem:[%s2958_s3 + $0xc0] sm:$0xff]  }
 0x18f   : > { %v2523_v60 = vld [vmem:[%s2958_s3 + $0x8] sm:$0xff]   ;;  %v2527_v4 = vld [vmem:[%s2958_s3] sm:$0xff]  }
 0x190   : > { %2198 = vmatpush3.bf16.msra.mxu0 %v2507_v42  ;;  %v2524_v62 = vld [vmem:[%s2958_s3 + $0x88] sm:$0xff]   ;;  %v2528_v5 = vld [vmem:[%s2958_s3 + $0x80] sm:$0xff]  }
 0x191   : > { %2220 = vmatpush3.bf16.msra.mxu1 %v2508_v43  ;;  %2199 = vmatprep.subr.bf16.mxu0 %v2509_v45  ;;  %v1523_v6 = vld [vmem:[%s2957_s2] sm:$0xf] }
 0x192   : > { %2221 = vmatprep.subr.bf16.mxu1 %v2510_v46  ;;  %v1528_v15 = vrot.slane %v1523_v6, %v1527_v61  ;;  %v1532_v7 = vrot.slane %v1523_v6, %v1531_v63  ;;  %v1536_v53 = vrot.slane %v1523_v6, %v1535_v2  ;;  %v1540_v44 = vrot.slane %v1523_v6, %v1539_v1  ;;  %v1522_v13 = vld [vmem:[#allocation2] sm:$0xff] }
 0x193   : > { %v2155_v31 = vld [vmem:[%s2959_s4] ss:$0 sm:$0xff] }
 0x194   : > { %2200 = vmatpush3.bf16.msra.mxu0 %v2511_v47  ;;  %v1541_v8 = vcombine.low %v1528_v15, %v1532_v7  ;;  %v1542_v9 = vcombine.low %v1536_v53, %v1540_v44 }
 0x195   : > { %2222 = vmatpush3.bf16.msra.mxu1 %v2512_v48  ;;  %2201 = vmatprep.subr.bf16.mxu0 %v2513_v49 }
 0x196   : > { %2223 = vmatprep.subr.bf16.mxu1 %v2514_v51  ;;  %v1549_v10 = vrot.slane %v1541_v8, %v2825_v22  ;;  %v1556_v12 = vrot.slane %v1542_v9, %v2825_v22 }
 0x198   : > { %2202 = vmatpush3.bf16.msra.mxu0 %v2515_v52  ;;  %v1557_v14 = vcombine.low %v1549_v10, %v1556_v12 }
 0x199   : > { %2224 = vmatpush3.bf16.msra.mxu1 %v2516_v54  ;;  %2203 = vmatprep.subr.bf16.mxu0 %v2517_v55 }
 0x19a   : > { %2225 = vmatprep.subr.bf16.mxu1 %v2518_v56  ;;  %v1559_v16 = vadd.f32 %v1557_v14, %v1522_v13 }
 0x19c   : > { %2204 = vmatpush3.bf16.msra.mxu0 %v2519_v57  ;;  %v1560_v17 = vmax.f32 %v1559_v16, 0.0 }
 0x19d   : > { %2226 = vmatpush3.bf16.msra.mxu1 %v2520_v58  ;;  %2205 = vmatprep.subr.bf16.mxu0 %v2521_v50 }
 0x19e   : > { %2227 = vmatprep.subr.bf16.mxu1 %v2522_v59  ;;  %v1569_v18 = vrot.slane %v1560_v17, %v2825_v22  ;;  %v1562_v19 = vcombine.high %v1560_v17, %v1560_v17 }
 0x1a0   : > { %2206 = vmatpush3.bf16.msra.mxu0 %v2523_v60  ;;  %v1577_v20 = vcombine.high %v1569_v18, %v1569_v18  ;;  %v1576_v21 = vrot.slane %v1562_v19, %v2825_v22  ;;  %v1583_v23 = vpack.c.bf16 %v1569_v18, %v1569_v18 }
 0x1a1   : > { %2228 = vmatpush3.bf16.msra.mxu1 %v2524_v62  ;;  %2207 = vmatprep.subr.bf16.mxu0 %v2525_v0 }
 0x1a2   : > { %2229 = vmatprep.subr.bf16.mxu1 %v2526_v3  ;;  %v1584_v25 = vpack.c.bf16 %v1577_v20, %v1577_v20  ;;  %v1578_v26 = vcombine.high %v1576_v21, %v1576_v21  ;;  %v1585_v27 = vpack.c.bf16 %v1576_v21, %v1576_v21 }
 0x1a4   : > { %2208 = vmatpush3.bf16.msra.mxu0 %v2527_v4  ;;  %1882 = vmatprep.mubr.bf16.mxu0 %v1584_v25  ;;  %v1586_v28 = vpack.c.bf16 %v1578_v26, %v1578_v26 }
 0x1a5   : > { %2230 = vmatpush3.bf16.msra.mxu1 %v2528_v5 }
 0x1a6   : > { %1922 = vmatprep.mubr.bf16.mxu1 %v1586_v28 }
 0x1a7   : > { %1883 = vmatmul.mubr.bf16.vlgmr.msra.gmra.mxu0 %v1583_v23 }
 0x1a8   : > { %1923 = vmatmul.mubr.bf16.vlgmr.msra.gmra.mxu1 %v1585_v27 }
 0x267   : > { %v2209_v29 = vpop.f32.mrf.mxu0 }
 0x268   : > { %v2231_v30 = vpop.f32.mrf.mxu1 }
 0x269   : > { %v2210_v32 = vpop.f32.mrf.mxu0 }
 0x26a   : > { %v2211_v11 = vadd.f32 %v2210_v32, %v2209_v29  ;;  %v2232_v33 = vpop.f32.mrf.mxu1 }
 0x26b   : > { %v2212_v34 = vpop.f32.mrf.mxu0  ;;  %v2233_v35 = vadd.f32 %v2232_v33, %v2231_v30 }
 0x26c   : > { %v1885_v22 = vadd.f32 %v2211_v11, %v2155_v31  ;;  %v2234_v36 = vpop.f32.mrf.mxu1 }
 0x26d   : > { %v2213_v24 = vpop.f32.mrf.mxu0 }
 0x26e   : > { %v1925_v37 = vadd.f32 %v2233_v35, %v1885_v22  ;;  %v2235_v38 = vpop.f32.mrf.mxu1 }
 0x270   : > { %1931 = vst.msk [vmem:[#allocation3] sm:$0x3] %vm1930_vm0, %v1925_v37 }
 0x271 PF: > { %p2241_p7 = scmp.eq.s32.totalorder %s2606_s19, 4  ;;  %s2569_s30 = smov [#allocation3]  }
 0x272   : > { %s1939_s6 = sshll.u32 %s2569_s30, 4  ;;  %s1940_s6 = int_to_ptr.vmem [resolvable:$true] %s1939_s6 }
 0x273   : > { %s2529_s7 = scalar_lea.vmem %s1940_s6, 32  ;;  %p2536_p11 = scmp.lt.s32.totalorder %s1940_s6, %s1940_s6 }
 0x274   : > { %p2530_p8 = scmp.ne.s32.totalorder %s1940_s6, %s2529_s7  ;;  %p2537_p12 = scmp.lt.s32.totalorder %s2529_s7, %s2529_s7 }
 0x276   : > { %p2531_p9 = pnand %p2530_p8, %p2241_p7  ;;  %p2538_p13 = por %p2537_p12, %p2536_p11 }
 0x278   : > { %p2532_p10 = pneg %p2531_p9 }
 0x27a   : > { %p2539_p0 = pnand %p2538_p13, %p2532_p10 }
 0x27c   : > { %2542 = shalt.err (!%p2539_p0)
}
 0x27d   : > { %2238 = dma.vmem_to_hbm [thread:$0]  (%p2241_p7), %s1940_s6, 32, %s2960_s5, [#allocation4]  }
 0x27e   : > { %2558 = dma.done.wait (%p2241_p7), [#allocation4], 32  }
 0x27f   : > { %2560 = vsyncadd (%p2241_p7), [#allocation4], 4294967264 }
 0x280 PF: > { %s16_s18 = sadd.s32 1, %s2563_s18  }
 0x281   : > { %p13_p1 = scmp.ge.s32.totalorder %s16_s18, 7  }
 0x283   :  { %15 = sbr.rel (!%p13_p1) target bundleno = 1 (0x1), region = 78 }
 0x288   :  { %1952 = vsyncpa [#allocation4], 1 }
 0x289   :  { %1954 = vsyncpa [#allocation4 + $0x1], 1 }

</bundles_post_ra>
